<compile_context>
chip_gen: v6e
topology: v6e:2x2x1
jax: 0.10.0
libtpu: 0.0.40
codegen_flags: <defaults>
</compile_context>

<pallas_src>
import functools

import jax
import jax.numpy as jnp
from jax.experimental import pallas as pl
from jax.experimental.pallas import tpu as pltpu

_LANE = 128
_TM_TARGET = 512    # output-row tile target
_TK_TARGET = 1024   # adjacency-column (reduction) tile target


def _round_up(x, m):
    return (x + m - 1) // m * m


def _vmem_limit_bytes():
    """Per-generation VMEM budget: <=3/4 of physical, capped at 100 MiB."""
    cap = None
    try:
        info = pltpu.get_tpu_info()
        cap = getattr(info, "vmem_capacity_bytes", None)
    except Exception:
        cap = None
    if not cap:
        cap = 64 * 1024 * 1024   # conservative (v7x-sized) fallback
    return min(int(cap) * 3 // 4, 100 * 1024 * 1024)


_VMEM_LIMIT = _vmem_limit_bytes()


def _pick_tile(n, target):
    """Pick a tile (multiple of 128) <= target and the padded extent.

    Prefers the largest tile whose zero-padding overhead is <= 25% of the
    (128-rounded) extent; degrades gracefully to 128 otherwise."""
    n128 = _round_up(n, _LANE)
    t_max = min((max(target, _LANE) // _LANE) * _LANE, n128)
    allowed = n128 // 4
    for t in range(t_max, _LANE - 1, -_LANE):
        padded = _round_up(n128, t)
        if padded - n128 <= allowed:
            return t, padded
    return _LANE, n128


def _pick_divisor_tile(n_pad, target):
    """Largest multiple of 128 <= target that divides n_pad (n_pad % 128 == 0)."""
    t = max(_LANE, min(target, n_pad))
    t = (t // _LANE) * _LANE
    while n_pad % t:
        t -= _LANE
    return t


def _pad_to(a, shape):
    pads = [(0, s - d) for d, s in zip(a.shape, shape)]
    return jnp.pad(a, pads)


# ---------------------------------------------------------------------------
# Kernel 1: seq[p] = x @ W[p]   (hoisted out of the adjacency GEMM)
# ---------------------------------------------------------------------------
def _seq_kernel(x_ref, w_ref, seq_ref):
    seq_ref[0] = jnp.dot(
        x_ref[...], w_ref[0], preferred_element_type=jnp.float32
    ).astype(seq_ref.dtype)


def _run_seq(x_p, w_p, *, tm):
    n_pad, f_pad = x_p.shape
    num_p, _, h_pad = w_p.shape
    return pl.pallas_call(
        _seq_kernel,
        out_shape=jax.ShapeDtypeStruct((num_p, n_pad, h_pad), x_p.dtype),
        grid=(num_p, n_pad // tm),
        in_specs=[
            pl.BlockSpec((tm, f_pad), lambda p, i: (i, 0)),
            pl.BlockSpec((1, f_pad, h_pad), lambda p, i: (p, 0, 0)),
        ],
        out_specs=pl.BlockSpec((1, tm, h_pad), lambda p, i: (p, i, 0)),
        compiler_params=pltpu.CompilerParams(
            dimension_semantics=("parallel", "parallel"),
            vmem_limit_bytes=_VMEM_LIMIT),
    )(x_p, w_p)


# ---------------------------------------------------------------------------
# Kernel 2: E[p] = PReLU(adj[p] @ seq[p] + b[p]), grid (row-tiles, P, K-tiles),
#           f32 accumulator, semantic per-row score fused into the epilogue,
#           seq held resident in VMEM (or streamed per-K as a fallback).
# ---------------------------------------------------------------------------
def _gcn_score_kernel(seq_resident, tk,
                      alpha_ref, adj_ref, seq_ref, b_ref, ws_ref, bs_ref, q_ref,
                      e_ref, score_ref, acc_ref):
    p = pl.program_id(1)
    k = pl.program_id(2)

    @pl.when(k == 0)
    def _init():
        acc_ref[...] = jnp.zeros_like(acc_ref)

    if seq_resident:
        # seq_ref holds the full (P, N_col, H) tensor; slice out this K chunk.
        kk = pl.multiple_of(k * tk, _LANE)
        seq_blk = seq_ref[p, pl.ds(kk, tk), :]
    else:
        seq_blk = seq_ref[0]

    acc_ref[...] += jnp.dot(adj_ref[0], seq_blk,
                            preferred_element_type=jnp.float32)

    @pl.when(k == pl.num_programs(2) - 1)
    def _finalize():
        alpha = alpha_ref[p]                         # scalar from SMEM
        y = acc_ref[...] + b_ref[0]                  # (TM, Hp) + (1, Hp)
        y = jnp.where(y > 0, y, alpha * y)           # PReLU
        # Fused semantic-attention score pass (from the f32 accumulator,
        # i.e. before the bf16 cast): tanh(E @ Ws + bs) . q per row.
        h = jnp.tanh(jnp.dot(y, ws_ref[...],
                             preferred_element_type=jnp.float32) + bs_ref[...])
        score_ref[0] = jnp.sum(h * q_ref[...], axis=-1, keepdims=True)
        e_ref[0] = y.astype(e_ref.dtype)             # bf16 (or f32) E write


def _run_gcn_score(alpha, adj_p, seq_p, b_p, ws_p, bs_p, q_p, *,
                   tm, tk, seq_resident, e_dtype):
    num_p, n_row_pad, n_col_pad = adj_p.shape
    h_pad = seq_p.shape[-1]
    s_pad = ws_p.shape[-1]

    if seq_resident:
        seq_spec = pl.BlockSpec((num_p, n_col_pad, h_pad),
                                lambda i, p, k, a: (0, 0, 0))   # fetched once
    else:
        seq_spec = pl.BlockSpec((1, tk, h_pad),
                                lambda i, p, k, a: (p, k, 0))   # streamed per K

    grid_spec = pltpu.PrefetchScalarGridSpec(
        num_scalar_prefetch=1,                       # alpha -> SMEM
        grid=(n_row_pad // tm, num_p, n_col_pad // tk),
        in_specs=[
            pl.BlockSpec((1, tm, tk), lambda i, p, k, a: (p, i, k)),     # adj tile
            seq_spec,                                                    # seq
            pl.BlockSpec((1, 1, h_pad), lambda i, p, k, a: (p, 0, 0)),   # bias
            pl.BlockSpec((h_pad, s_pad), lambda i, p, k, a: (0, 0)),     # Ws
            pl.BlockSpec((1, s_pad), lambda i, p, k, a: (0, 0)),         # bs
            pl.BlockSpec((1, s_pad), lambda i, p, k, a: (0, 0)),         # q
        ],
        out_specs=[
            pl.BlockSpec((1, tm, h_pad), lambda i, p, k, a: (p, i, 0)),  # E
            pl.BlockSpec((1, tm, 1), lambda i, p, k, a: (p, i, 0)),      # row scores
        ],
        scratch_shapes=[pltpu.VMEM((tm, h_pad), jnp.float32)],
    )
    return pl.pallas_call(
        functools.partial(_gcn_score_kernel, seq_resident, tk),
        grid_spec=grid_spec,
        out_shape=(jax.ShapeDtypeStruct((num_p, n_row_pad, h_pad), e_dtype),
                   jax.ShapeDtypeStruct((num_p, n_row_pad, 1), jnp.float32)),
        compiler_params=pltpu.CompilerParams(
            dimension_semantics=("parallel", "parallel", "arbitrary"),
            vmem_limit_bytes=_VMEM_LIMIT),
    )(alpha, adj_p, seq_p, b_p, ws_p, bs_p, q_p)


# ---------------------------------------------------------------------------
# Kernel 3: fused = sum_p att2[p] * E[p], tiled over nodes (lane-dense output,
#           f32 accumulation over bf16 E)
# ---------------------------------------------------------------------------
def _fuse_kernel(att2_ref, e_ref, out_ref):
    num_p = e_ref.shape[0]
    acc = att2_ref[0] * e_ref[0].astype(jnp.float32)
    for p in range(1, num_p):                        # static, tiny P
        acc = acc + att2_ref[p] * e_ref[p].astype(jnp.float32)
    out_ref[...] = acc.astype(out_ref.dtype)


def _run_fuse(att2_vec, e_p, *, tm):
    num_p, n_row_pad, h_pad = e_p.shape
    grid_spec = pltpu.PrefetchScalarGridSpec(
        num_scalar_prefetch=1,                       # att2 -> SMEM
        grid=(n_row_pad // tm,),
        in_specs=[pl.BlockSpec((num_p, tm, h_pad), lambda i, a: (0, i, 0))],
        out_specs=pl.BlockSpec((tm, h_pad), lambda i, a: (i, 0)),
    )
    return pl.pallas_call(
        _fuse_kernel,
        grid_spec=grid_spec,
        out_shape=jax.ShapeDtypeStruct((n_row_pad, h_pad), jnp.float32),
        compiler_params=pltpu.CompilerParams(
            dimension_semantics=("parallel",),
            vmem_limit_bytes=_VMEM_LIMIT),
    )(att2_vec, e_p)


# ---------------------------------------------------------------------------
# Full HGCN forward
# ---------------------------------------------------------------------------
@functools.partial(
    jax.jit,
    static_argnames=("compute_dtype", "tm_target", "tk_target", "seq_resident"))
def hgcn_forward(x, adjs, params, compute_dtype=jnp.bfloat16,
                 tm_target=_TM_TARGET, tk_target=_TK_TARGET, seq_resident=None):
    n, f = x.shape
    num_p = adjs.shape[0]
    h = params["gcn_w"].shape[2]
    s = params["sem_w"].shape[1]

    f_pad = _round_up(f, _LANE)
    h_pad = _round_up(h, _LANE)
    s_pad = _round_up(s, _LANE)
    # Rows (output tiles) and columns (reduction tiles) padded independently so
    # awkward N never collapses the tiles to 128x128.
    tm, n_row_pad = _pick_tile(n, tm_target)
    tk, n_col_pad = _pick_tile(n, tk_target)
    tm_seq = _pick_divisor_tile(n_col_pad, 512)

    itemsize = jnp.dtype(compute_dtype).itemsize
    if seq_resident is None:
        # Resident seq costs ~2 buffers of (P, N_col, H); keep it well inside
        # the per-generation VMEM budget, else fall back to per-K streaming.
        resident_bytes = 2 * num_p * n_col_pad * h_pad * itemsize
        seq_resident = resident_bytes <= _VMEM_LIMIT // 4

    # Pad to lane-friendly shapes; bf16 on the dominant N^2 adjacency stream.
    x_p = _pad_to(x, (n_col_pad, f_pad)).astype(compute_dtype)
    adj_p = _pad_to(adjs, (num_p, n_row_pad, n_col_pad)).astype(compute_dtype)
    w_p = _pad_to(params["gcn_w"], (num_p, f_pad, h_pad)).astype(compute_dtype)
    b_p = _pad_to(params["gcn_b"], (num_p, h_pad)).reshape(num_p, 1, h_pad).astype(jnp.float32)
    alpha = params["gcn_alpha"].reshape(num_p).astype(jnp.float32)
    ws_p = _pad_to(params["sem_w"], (h_pad, s_pad)).astype(jnp.float32)
    bs_p = _pad_to(params["sem_b"], (1, s_pad)).astype(jnp.float32)
    q_p = _pad_to(params["sem_q"], (1, s_pad)).astype(jnp.float32)

    # (1) seq[p] = x @ W[p]
    seq = _run_seq(x_p, w_p, tm=tm_seq)

    # (2) E[p] = PReLU(adj[p] @ seq[p] + b[p]) with fused per-row attention
    #     scores; E emitted in compute_dtype to halve its HBM traffic.
    e_p, row_scores = _run_gcn_score(alpha, adj_p, seq, b_p, ws_p, bs_p, q_p,
                                     tm=tm, tk=tk, seq_resident=seq_resident,
                                     e_dtype=compute_dtype)

    # (3) tiny (P,)-softmax outside the kernels (padded rows sliced away here).
    att_raw = jnp.mean(row_scores[:, :n, 0], axis=1, keepdims=True)     # (P, 1)
    att1 = jax.nn.softmax(att_raw, axis=0)
    att2 = att1 * params["metapath_weight"].astype(jnp.float32)
    att2 = att2 / jnp.sum(att2)

    # (4) fused = sum_p att2[p] * E[p]
    fused = _run_fuse(att2[:, 0], e_p, tm=tm)[:n, :h]
    return att1, att2, fused[None, :, :]                  # torch.unsqueeze(x, 0)


# ---------------------------------------------------------------------------
# Pure-JAX reference (same math, no Pallas) for verification
# ---------------------------------------------------------------------------
def hgcn_reference(x, adjs, params):
    num_p = adjs.shape[0]
    outs = []
    for p in range(num_p):
        seq = x @ params["gcn_w"][p]
        agg = adjs[p] @ seq + params["gcn_b"][p]
        a = params["gcn_alpha"][p, 0]
        outs.append(jnp.where(agg > 0, agg, a * agg))
    e = jnp.stack(outs, axis=0)
    h = jnp.tanh(jnp.einsum('pnh,hs->pns', e, params["sem_w"]) + params["sem_b"])
    scores = jnp.sum(h * params["sem_q"], axis=-1)
    att_raw = jnp.mean(scores, axis=1, keepdims=True)
    att1 = jax.nn.softmax(att_raw, axis=0)
    att2 = att1 * params["metapath_weight"]
    att2 = att2 / jnp.sum(att2)
    fused = jnp.sum(e * att2[:, :, None], axis=0)
    return att1, att2, fused[None, :, :]


def _make_inputs(key, P, N, nfeat, nhid, shid):
    keys = jax.random.split(key, 6)
    x = jax.random.normal(keys[0], (N, nfeat), dtype=jnp.float32)
    raw = jax.random.uniform(keys[1], (P, N, N), dtype=jnp.float32) + jnp.eye(N)[None]
    adjs = raw / jnp.sum(raw, axis=-1, keepdims=True)      # row-normalized
    params = {
        "gcn_w": jax.random.normal(keys[2], (P, nfeat, nhid), jnp.float32)
                 * (2.0 / (nfeat + nhid)) ** 0.5,
        "gcn_b": jnp.zeros((P, nhid), jnp.float32),
        "gcn_alpha": jnp.full((P, 1), 0.25, jnp.float32),
        "sem_w": jax.random.normal(keys[3], (nhid, shid), jnp.float32)
                 * 1.414 * (2.0 / (nhid + shid)) ** 0.5,
        "sem_b": jax.random.normal(keys[4], (1, shid), jnp.float32) * 0.1,
        "sem_q": jax.random.normal(keys[5], (1, shid), jnp.float32) * 0.1,
        "metapath_weight": jnp.linspace(0.5, 2.0, P).reshape(P, 1).astype(jnp.float32),
    }
    return x, adjs, params


if __name__ == "__main__":
    key = jax.random.PRNGKey(0)
    # (P, N, nfeat, nhid, shid, extra static kwargs)
    cases = [
        (3, 16, 32, 32, 16, {}),                                # single 128 tile
        (3, 520, 48, 40, 24, {}),                               # asym row/col padding
        (3, 520, 48, 40, 24, dict(tm_target=256, tk_target=256)),  # multi-K accumulation
        (3, 520, 48, 40, 24, dict(tk_target=256, seq_resident=False)),  # streamed-seq path
    ]
    for ci, (P, N, nfeat, nhid, shid, kw) in enumerate(cases):
        key, sub = jax.random.split(key)
        x, adjs, params = _make_inputs(sub, P, N, nfeat, nhid, shid)
        r1, r2, rout = hgcn_reference(x, adjs, params)

        for dtype, tol in ((jnp.float32, 1e-2), (jnp.bfloat16, 5e-2)):
            att1, att2, out = hgcn_forward(x, adjs, params, compute_dtype=dtype, **kw)
            jax.block_until_ready(out)
            assert att1.shape == (P, 1) and att2.shape == (P, 1)
            assert out.shape == (1, N, nhid)
            assert jnp.allclose(att1, r1, atol=tol, rtol=tol), (ci, str(dtype), "att1")
            assert jnp.allclose(att2, r2, atol=tol, rtol=tol), (ci, str(dtype), "att2")
            assert jnp.allclose(out, rout, atol=tol, rtol=tol), (ci, str(dtype), "out")

    print("KERNEL_OK")
</pallas_src>

<mosaic_0001>
module attributes {stable_mosaic.version = 11 : i64} {
  func.func @_fuse_kernel(%arg0: i32, %arg1: memref<3xf32, #tpu.memory_space<smem>>, %arg2: memref<3x128x128xf32, #tpu.memory_space<vmem>>, %arg3: memref<128x128xf32, #tpu.memory_space<vmem>>) attributes {dimension_semantics = [#tpu.dimension_semantics<parallel>], iteration_bounds = array<i64: 1>, scalar_prefetch = 1 : i64, scratch_operands = 0 : i64, tpu.core_type = #tpu.core_type<tc>, window_params = [{transform_indices = @transform_0, window_bounds = array<i64: 3, 128, 128>}, {transform_indices = @transform_1, window_bounds = array<i64: 128, 128>}]} {
    %c0 = arith.constant 0 : index
    %0 = memref.load %arg1[%c0] : memref<3xf32, #tpu.memory_space<smem>>
    %c0_0 = arith.constant 0 : index
    %c0_1 = arith.constant 0 : index
    %c0_2 = arith.constant 0 : index
    %1 = vector.load %arg2[%c0_0, %c0_1, %c0_2] : memref<3x128x128xf32, #tpu.memory_space<vmem>>, vector<1x128x128xf32>
    %2 = vector.shape_cast %1 : vector<1x128x128xf32> to vector<128x128xf32>
    %3 = vector.broadcast %0 : f32 to vector<128x128xf32>
    %4 = arith.mulf %3, %2 : vector<128x128xf32>
    %c1 = arith.constant 1 : index
    %5 = memref.load %arg1[%c1] : memref<3xf32, #tpu.memory_space<smem>>
    %c1_3 = arith.constant 1 : index
    %c0_4 = arith.constant 0 : index
    %c0_5 = arith.constant 0 : index
    %6 = vector.load %arg2[%c1_3, %c0_4, %c0_5] : memref<3x128x128xf32, #tpu.memory_space<vmem>>, vector<1x128x128xf32>
    %7 = vector.shape_cast %6 : vector<1x128x128xf32> to vector<128x128xf32>
    %8 = vector.broadcast %5 : f32 to vector<128x128xf32>
    %9 = arith.mulf %8, %7 : vector<128x128xf32>
    %10 = arith.addf %4, %9 : vector<128x128xf32>
    %c2 = arith.constant 2 : index
    %11 = memref.load %arg1[%c2] : memref<3xf32, #tpu.memory_space<smem>>
    %c2_6 = arith.constant 2 : index
    %c0_7 = arith.constant 0 : index
    %c0_8 = arith.constant 0 : index
    %12 = vector.load %arg2[%c2_6, %c0_7, %c0_8] : memref<3x128x128xf32, #tpu.memory_space<vmem>>, vector<1x128x128xf32>
    %13 = vector.shape_cast %12 : vector<1x128x128xf32> to vector<128x128xf32>
    %14 = vector.broadcast %11 : f32 to vector<128x128xf32>
    %15 = arith.mulf %14, %13 : vector<128x128xf32>
    %16 = arith.addf %10, %15 : vector<128x128xf32>
    %c0_9 = arith.constant 0 : index
    %c0_10 = arith.constant 0 : index
    %17 = vector.load %arg3[%c0_9, %c0_10] : memref<128x128xf32, #tpu.memory_space<vmem>>, vector<128x128xf32>
    tpu.vector_store %arg3[%c0_9, %c0_10], %16 {strides = array<i32>} : memref<128x128xf32, #tpu.memory_space<vmem>>, vector<128x128xf32>,
    return
  }
  func.func @transform_0(%arg0: i32, %arg1: memref<3xf32, #tpu.memory_space<smem>>) -> (i32, i32, i32) {
    %c0_i32 = arith.constant 0 : i32
    %c0_i32_0 = arith.constant 0 : i32
    %c0_i32_1 = arith.constant 0 : i32
    return %c0_i32, %arg0, %c0_i32_0 : i32, i32, i32
  }
  func.func @transform_1(%arg0: i32, %arg1: memref<3xf32, #tpu.memory_space<smem>>) -> (i32, i32) {
    %c0_i32 = arith.constant 0 : i32
    %c0_i32_0 = arith.constant 0 : i32
    return %arg0, %c0_i32 : i32, i32
  }
}

module attributes {stable_mosaic.version = 11 : i64} {
  func.func @_seq_kernel(%arg0: i32, %arg1: i32, %arg2: memref<128x128xf32, #tpu.memory_space<vmem>>, %arg3: memref<1x128x128xf32, #tpu.memory_space<vmem>>, %arg4: memref<1x128x128xf32, #tpu.memory_space<vmem>>) attributes {dimension_semantics = [#tpu.dimension_semantics<parallel>, #tpu.dimension_semantics<parallel>], iteration_bounds = array<i64: 3, 1>, scalar_prefetch = 0 : i64, scratch_operands = 0 : i64, tpu.core_type = #tpu.core_type<tc>, window_params = [{transform_indices = @transform_0, window_bounds = array<i64: 128, 128>}, {transform_indices = @transform_1, window_bounds = array<i64: 1, 128, 128>}, {transform_indices = @transform_2, window_bounds = array<i64: 1, 128, 128>}]} {
    %c0 = arith.constant 0 : index
    %c0_0 = arith.constant 0 : index
    %0 = vector.load %arg2[%c0, %c0_0] : memref<128x128xf32, #tpu.memory_space<vmem>>, vector<128x128xf32>
    %c0_1 = arith.constant 0 : index
    %c0_2 = arith.constant 0 : index
    %c0_3 = arith.constant 0 : index
    %1 = vector.load %arg3[%c0_1, %c0_2, %c0_3] : memref<1x128x128xf32, #tpu.memory_space<vmem>>, vector<1x128x128xf32>
    %2 = vector.shape_cast %1 : vector<1x128x128xf32> to vector<128x128xf32>
    %cst = arith.constant dense<0.000000e+00> : vector<128x128xf32>
    %3 = tpu.matmul %0, %2, %cst {dimension_numbers = #tpu.dot_dimension_numbers<[1], [0], [0], [1], [0, 0, 1, 1], [], []>} : vector<128x128xf32>, vector<128x128xf32>, vector<128x128xf32> -> vector<128x128xf32>
    %c0_4 = arith.constant 0 : index
    %c0_5 = arith.constant 0 : index
    %c0_6 = arith.constant 0 : index
    %4 = vector.load %arg4[%c0_4, %c0_5, %c0_6] : memref<1x128x128xf32, #tpu.memory_space<vmem>>, vector<1x128x128xf32>
    %5 = vector.shape_cast %4 : vector<1x128x128xf32> to vector<128x128xf32>
    %6 = vector.shape_cast %3 : vector<128x128xf32> to vector<1x128x128xf32>
    tpu.vector_store %arg4[%c0_4, %c0_5, %c0_6], %6 {strides = array<i32>} : memref<1x128x128xf32, #tpu.memory_space<vmem>>, vector<1x128x128xf32>,
    return
  }
  func.func @transform_0(%arg0: i32, %arg1: i32) -> (i32, i32) {
    %c0_i32 = arith.constant 0 : i32
    %c0_i32_0 = arith.constant 0 : i32
    return %arg1, %c0_i32 : i32, i32
  }
  func.func @transform_1(%arg0: i32, %arg1: i32) -> (i32, i32, i32) {
    %c0_i32 = arith.constant 0 : i32
    %c0_i32_0 = arith.constant 0 : i32
    %c0_i32_1 = arith.constant 0 : i32
    return %arg0, %c0_i32, %c0_i32_0 : i32, i32, i32
  }
  func.func @transform_2(%arg0: i32, %arg1: i32) -> (i32, i32, i32) {
    %c0_i32 = arith.constant 0 : i32
    %c0_i32_0 = arith.constant 0 : i32
    return %arg0, %arg1, %c0_i32 : i32, i32, i32
  }
}

module attributes {stable_mosaic.version = 11 : i64} {
  func.func @_gcn_score_kernel(%arg0: i32, %arg1: i32, %arg2: i32, %arg3: memref<3xf32, #tpu.memory_space<smem>>, %arg4: memref<1x128x128xf32, #tpu.memory_space<vmem>>, %arg5: memref<3x128x128xf32, #tpu.memory_space<vmem>>, %arg6: memref<1x1x128xf32, #tpu.memory_space<vmem>>, %arg7: memref<128x128xf32, #tpu.memory_space<vmem>>, %arg8: memref<1x128xf32, #tpu.memory_space<vmem>>, %arg9: memref<1x128xf32, #tpu.memory_space<vmem>>, %arg10: memref<1x128x128xf32, #tpu.memory_space<vmem>>, %arg11: memref<1x128x1xf32, #tpu.memory_space<vmem>>, %arg12: memref<128x128xf32, #tpu.memory_space<vmem>>) attributes {dimension_semantics = [#tpu.dimension_semantics<parallel>, #tpu.dimension_semantics<parallel>, #tpu.dimension_semantics<arbitrary>], iteration_bounds = array<i64: 1, 3, 1>, scalar_prefetch = 1 : i64, scratch_operands = 1 : i64, tpu.core_type = #tpu.core_type<tc>, window_params = [{transform_indices = @transform_0, window_bounds = array<i64: 1, 128, 128>}, {pipeline_mode = #tpu.pipeline_mode<synchronous>, transform_indices = @transform_1, window_bounds = array<i64: 3, 128, 128>}, {transform_indices = @transform_2, window_bounds = array<i64: 1, 1, 128>}, {pipeline_mode = #tpu.pipeline_mode<synchronous>, transform_indices = @transform_3, window_bounds = array<i64: 128, 128>}, {pipeline_mode = #tpu.pipeline_mode<synchronous>, transform_indices = @transform_4, window_bounds = array<i64: 1, 128>}, {pipeline_mode = #tpu.pipeline_mode<synchronous>, transform_indices = @transform_5, window_bounds = array<i64: 1, 128>}, {transform_indices = @transform_6, window_bounds = array<i64: 1, 128, 128>}, {transform_indices = @transform_7, window_bounds = array<i64: 1, 128, 1>}]} {
    %c0_i32 = arith.constant 0 : i32
    %0 = arith.cmpi eq, %arg2, %c0_i32 : i32
    %1 = arith.extui %0 : i1 to i32
    %c0_i32_0 = arith.constant 0 : i32
    %2 = arith.cmpi ne, %1, %c0_i32_0 : i32
    scf.if %2 {
      %cst_10 = arith.constant 0.000000e+00 : f32
      %18 = vector.broadcast %cst_10 : f32 to vector<128x128xf32>
      %c0_11 = arith.constant 0 : index
      %c0_12 = arith.constant 0 : index
      %19 = vector.load %arg12[%c0_11, %c0_12] : memref<128x128xf32, #tpu.memory_space<vmem>>, vector<128x128xf32>
      tpu.vector_store %arg12[%c0_11, %c0_12], %18 {strides = array<i32>} : memref<128x128xf32, #tpu.memory_space<vmem>>, vector<128x128xf32>,
    } else {
    }
    %c128_i32 = arith.constant 128 : i32
    %3 = arith.muli %arg2, %c128_i32 : i32
    %4 = tpu.assume_multiple %3, 128 : i32
    %5 = arith.index_cast %arg1 : i32 to index
    %6 = arith.index_cast %4 : i32 to index
    %c0 = arith.constant 0 : index
    %7 = vector.load %arg5[%5, %6, %c0] : memref<3x128x128xf32, #tpu.memory_space<vmem>>, vector<1x128x128xf32>
    %8 = vector.shape_cast %7 : vector<1x128x128xf32> to vector<128x128xf32>
    %c0_1 = arith.constant 0 : index
    %c0_2 = arith.constant 0 : index
    %9 = vector.load %arg12[%c0_1, %c0_2] : memref<128x128xf32, #tpu.memory_space<vmem>>, vector<128x128xf32>
    %c0_3 = arith.constant 0 : index
    %c0_4 = arith.constant 0 : index
    %c0_5 = arith.constant 0 : index
    %10 = vector.load %arg4[%c0_3, %c0_4, %c0_5] : memref<1x128x128xf32, #tpu.memory_space<vmem>>, vector<1x128x128xf32>
    %11 = vector.shape_cast %10 : vector<1x128x128xf32> to vector<128x128xf32>
    %cst = arith.constant dense<0.000000e+00> : vector<128x128xf32>
    %12 = tpu.matmul %11, %8, %cst {dimension_numbers = #tpu.dot_dimension_numbers<[1], [0], [0], [1], [0, 0, 1, 1], [], []>} : vector<128x128xf32>, vector<128x128xf32>, vector<128x128xf32> -> vector<128x128xf32>
    %13 = arith.addf %9, %12 : vector<128x128xf32>
    %c0_6 = arith.constant 0 : index
    %c0_7 = arith.constant 0 : index
    %14 = vector.load %arg12[%c0_6, %c0_7] : memref<128x128xf32, #tpu.memory_space<vmem>>, vector<128x128xf32>
    tpu.vector_store %arg12[%c0_6, %c0_7], %13 {strides = array<i32>} : memref<128x128xf32, #tpu.memory_space<vmem>>, vector<128x128xf32>,
    %c0_i32_8 = arith.constant 0 : i32
    %15 = arith.cmpi eq, %arg2, %c0_i32_8 : i32
    %16 = arith.extui %15 : i1 to i32
    %c0_i32_9 = arith.constant 0 : i32
    %17 = arith.cmpi ne, %16, %c0_i32_9 : i32
    scf.if %17 {
      %18 = arith.index_cast %arg1 : i32 to index
      %19 = memref.load %arg3[%18] : memref<3xf32, #tpu.memory_space<smem>>
      %c0_10 = arith.constant 0 : index
      %c0_11 = arith.constant 0 : index
      %20 = vector.load %arg12[%c0_10, %c0_11] : memref<128x128xf32, #tpu.memory_space<vmem>>, vector<128x128xf32>
      %c0_12 = arith.constant 0 : index
      %c0_13 = arith.constant 0 : index
      %c0_14 = arith.constant 0 : index
      %21 = vector.load %arg6[%c0_12, %c0_13, %c0_14] : memref<1x1x128xf32, #tpu.memory_space<vmem>>, vector<1x1x128xf32>
      %22 = vector.shape_cast %21 : vector<1x1x128xf32> to vector<1x128xf32>
      %23 = vector.broadcast %22 : vector<1x128xf32> to vector<128x128xf32>
      %24 = arith.addf %20, %23 : vector<128x128xf32>
      %cst_15 = arith.constant 0.000000e+00 : f32
      %25 = vector.broadcast %cst_15 : f32 to vector<128x128xf32>
      %26 = arith.cmpf ogt, %24, %25 : vector<128x128xf32>
      %27 = vector.broadcast %19 : f32 to vector<128x128xf32>
      %28 = arith.mulf %27, %24 : vector<128x128xf32>
      %29 = arith.select %26, %24, %28 : vector<128x128xi1>, vector<128x128xf32>
      %c0_16 = arith.constant 0 : index
      %c0_17 = arith.constant 0 : index
      %30 = vector.load %arg7[%c0_16, %c0_17] : memref<128x128xf32, #tpu.memory_space<vmem>>, vector<128x128xf32>
      %cst_18 = arith.constant dense<0.000000e+00> : vector<128x128xf32>
      %31 = tpu.matmul %29, %30, %cst_18 {dimension_numbers = #tpu.dot_dimension_numbers<[1], [0], [0], [1], [0, 0, 1, 1], [], []>} : vector<128x128xf32>, vector<128x128xf32>, vector<128x128xf32> -> vector<128x128xf32>
      %c0_19 = arith.constant 0 : index
      %c0_20 = arith.constant 0 : index
      %32 = vector.load %arg8[%c0_19, %c0_20] : memref<1x128xf32, #tpu.memory_space<vmem>>, vector<1x128xf32>
      %33 = vector.broadcast %32 : vector<1x128xf32> to vector<128x128xf32>
      %34 = arith.addf %31, %33 : vector<128x128xf32>
      %35 = math.tanh %34 : vector<128x128xf32>
      %c0_21 = arith.constant 0 : index
      %c0_22 = arith.constant 0 : index
      %36 = vector.load %arg9[%c0_21, %c0_22] : memref<1x128xf32, #tpu.memory_space<vmem>>, vector<1x128xf32>
      %37 = vector.broadcast %36 : vector<1x128xf32> to vector<128x128xf32>
      %38 = arith.mulf %35, %37 : vector<128x128xf32>
      %cst_23 = arith.constant dense<0.000000e+00> : vector<128xf32>
      %39 = vector.multi_reduction <add>, %38, %cst_23 [1] : vector<128x128xf32> to vector<128xf32>
      %40 = vector.shape_cast %39 : vector<128xf32> to vector<128x1xf32>
      %c0_24 = arith.constant 0 : index
      %c0_25 = arith.constant 0 : index
      %c0_26 = arith.constant 0 : index
      %41 = vector.load %arg11[%c0_24, %c0_25, %c0_26] : memref<1x128x1xf32, #tpu.memory_space<vmem>>, vector<1x128x1xf32>
      %42 = vector.shape_cast %41 : vector<1x128x1xf32> to vector<128x1xf32>
      %43 = vector.shape_cast %40 : vector<128x1xf32> to vector<1x128x1xf32>
      tpu.vector_store %arg11[%c0_24, %c0_25, %c0_26], %43 {strides = array<i32>} : memref<1x128x1xf32, #tpu.memory_space<vmem>>, vector<1x128x1xf32>,
      %c0_27 = arith.constant 0 : index
      %c0_28 = arith.constant 0 : index
      %c0_29 = arith.constant 0 : index
      %44 = vector.load %arg10[%c0_27, %c0_28, %c0_29] : memref<1x128x128xf32, #tpu.memory_space<vmem>>, vector<1x128x128xf32>
      %45 = vector.shape_cast %44 : vector<1x128x128xf32> to vector<128x128xf32>
      %46 = vector.shape_cast %29 : vector<128x128xf32> to vector<1x128x128xf32>
      tpu.vector_store %arg10[%c0_27, %c0_28, %c0_29], %46 {strides = array<i32>} : memref<1x128x128xf32, #tpu.memory_space<vmem>>, vector<1x128x128xf32>,
    } else {
    }
    return
  }
  func.func @transform_0(%arg0: i32, %arg1: i32, %arg2: i32, %arg3: memref<3xf32, #tpu.memory_space<smem>>) -> (i32, i32, i32) {
    %c0_i32 = arith.constant 0 : i32
    return %arg1, %arg0, %arg2 : i32, i32, i32
  }
  func.func @transform_1(%arg0: i32, %arg1: i32, %arg2: i32, %arg3: memref<3xf32, #tpu.memory_space<smem>>) -> (i32, i32, i32) {
    %c0_i32 = arith.constant 0 : i32
    %c0_i32_0 = arith.constant 0 : i32
    %c0_i32_1 = arith.constant 0 : i32
    %c0_i32_2 = arith.constant 0 : i32
    return %c0_i32, %c0_i32_0, %c0_i32_1 : i32, i32, i32
  }
  func.func @transform_2(%arg0: i32, %arg1: i32, %arg2: i32, %arg3: memref<3xf32, #tpu.memory_space<smem>>) -> (i32, i32, i32) {
    %c0_i32 = arith.constant 0 : i32
    %c0_i32_0 = arith.constant 0 : i32
    %c0_i32_1 = arith.constant 0 : i32
    return %arg1, %c0_i32, %c0_i32_0 : i32, i32, i32
  }
  func.func @transform_3(%arg0: i32, %arg1: i32, %arg2: i32, %arg3: memref<3xf32, #tpu.memory_space<smem>>) -> (i32, i32) {
    %c0_i32 = arith.constant 0 : i32
    %c0_i32_0 = arith.constant 0 : i32
    %c0_i32_1 = arith.constant 0 : i32
    return %c0_i32, %c0_i32_0 : i32, i32
  }
  func.func @transform_4(%arg0: i32, %arg1: i32, %arg2: i32, %arg3: memref<3xf32, #tpu.memory_space<smem>>) -> (i32, i32) {
    %c0_i32 = arith.constant 0 : i32
    %c0_i32_0 = arith.constant 0 : i32
    %c0_i32_1 = arith.constant 0 : i32
    return %c0_i32, %c0_i32_0 : i32, i32
  }
  func.func @transform_5(%arg0: i32, %arg1: i32, %arg2: i32, %arg3: memref<3xf32, #tpu.memory_space<smem>>) -> (i32, i32) {
    %c0_i32 = arith.constant 0 : i32
    %c0_i32_0 = arith.constant 0 : i32
    %c0_i32_1 = arith.constant 0 : i32
    return %c0_i32, %c0_i32_0 : i32, i32
  }
  func.func @transform_6(%arg0: i32, %arg1: i32, %arg2: i32, %arg3: memref<3xf32, #tpu.memory_space<smem>>) -> (i32, i32, i32) {
    %c0_i32 = arith.constant 0 : i32
    %c0_i32_0 = arith.constant 0 : i32
    return %arg1, %arg0, %c0_i32 : i32, i32, i32
  }
  func.func @transform_7(%arg0: i32, %arg1: i32, %arg2: i32, %arg3: memref<3xf32, #tpu.memory_space<smem>>) -> (i32, i32, i32) {
    %c0_i32 = arith.constant 0 : i32
    %c0_i32_0 = arith.constant 0 : i32
    return %arg1, %arg0, %c0_i32 : i32, i32, i32
  }
}

</mosaic_0001>

<bundles_post_ra>
// kernel: hgcn_forward.3
= control target key start
LH: loop header
LB: loop body
LE: loop exit
PB: predicated region body
PF: predicated region fallthrough
CT: control target
= control target key end

     0   :  { %s675_s9 = smov 0   ;;  %s677_s10 = smov 0   ;;  %s799_s0 = inlined_call_operand.vmem [shape: f32[128,128], index: 0, kind: input, shape index: {}]   ;;  %s800_s1 = inlined_call_operand.vmem [shape: f32[3,128,128], index: 1, kind: input, shape index: {}]   ;;  %s801_s2 = inlined_call_operand.vmem [shape: f32[3,128,128], index: 2, kind: output, shape index: {}]  }
   0x1   :  { %s679_s11 = smov 0  }
   0x2 LB: > { %s24_s12 = sadd.s32 1, %s654_s10  ;;  %p483_p0 = scmp.ge.s32.totalorder %s658_s11, 1  ;;  %s658_s11 = sphi %s679_s11, %s12_s11   ;;  %s654_s10 = sphi %s677_s10, %s803_s10   ;;  %s650_s9 = sphi %s675_s9, %s802_s9  }
   0x3   : > { %p26_p1 = scmp.ge.s32.totalorder %s24_s12, 3  ;;  %p137_p2 = scmp.lt.s32.totalorder %s658_s11, 4 }
   0x5   : > { %s805_s12 = smov (%p26_p1, %s24_s12), 0  ;;  %p138_p3 = pnand %p483_p0, %p137_p2 }
   0x6   : > { %p174_p4 = scmp.lt.s32.totalorder (!%p138_p3), %s650_s9, 2 }
   0x7   : > { %141 = sbr.rel (%p138_p3) target bundleno = 256 (0x100), region = 28 }
   0xc   : > { %v189_v0 = vld [vmem:[%s799_s0] sm:$0xff]  ;;  %s807_s9 = smov (!%p174_p4, %s650_s9), 2  ;;  %v190_v18 = vld [vmem:[%s799_s0 + $0x8] sm:$0xff]  ;;  %v191_v20 = vld [vmem:[%s799_s0 + $0x10] sm:$0xff] }
   0xd   : > { %v197_v1 = vld [vmem:[%s799_s0 + $0x40] sm:$0xff]  ;;  %556 = vmatprep.mubr.f32.mxu0 %v189_v0  ;;  %s490_s17 = sshll.u32 %s807_s9, 7  ;;  %v198_v19 = vld [vmem:[%s799_s0 + $0x48] sm:$0xff]  ;;  %v199_v21 = vld [vmem:[%s799_s0 + $0x50] sm:$0xff] }
   0xe   : > { %568 = vmatprep.mubr.f32.mxu1 %v197_v1  ;;  %s707_s20 = scalar_lea.vmem %s800_s1, %s490_s17  ;;  %v192_v22 = vld [vmem:[%s799_s0 + $0x18] sm:$0xff]  ;;  %v193_v24 = vld [vmem:[%s799_s0 + $0x20] sm:$0xff]  ;;  %v194_v26 = vld [vmem:[%s799_s0 + $0x28] sm:$0xff]  ;;  %s772_s28 = scalar_lea.vmem %s801_s2, %s490_s17 }
   0xf   : > { %v220_v2 = vld [vmem:[%s707_s20 + $0x78] sm:$0xff]  ;;  %v219_v3 = vld [vmem:[%s707_s20 + $0x70] sm:$0xff]  ;;  %v218_v4 = vld [vmem:[%s707_s20 + $0x68] sm:$0xff] }
  0x10   : > { %524 = vmatprep.subr.mxu0 %v220_v2  ;;  %580 = vmatprep.subr.mxu1 %v220_v2  ;;  %v217_v5 = vld [vmem:[%s707_s20 + $0x60] sm:$0xff]  ;;  %v216_v6 = vld [vmem:[%s707_s20 + $0x58] sm:$0xff]  ;;  %v215_v7 = vld [vmem:[%s707_s20 + $0x50] sm:$0xff] }
  0x11   : > { %525 = vmatpush3.msra.mxu0 %v220_v2  ;;  %596 = vmatpush3.msra.mxu1 %v220_v2  ;;  %v214_v8 = vld [vmem:[%s707_s20 + $0x48] sm:$0xff]  ;;  %v213_v9 = vld [vmem:[%s707_s20 + $0x40] sm:$0xff]  ;;  %v212_v10 = vld [vmem:[%s707_s20 + $0x38] sm:$0xff] }
  0x12   : > { %526 = vmatprep.subr.mxu0 %v219_v3  ;;  %581 = vmatprep.subr.mxu1 %v219_v3  ;;  %v211_v11 = vld [vmem:[%s707_s20 + $0x30] sm:$0xff]  ;;  %v210_v12 = vld [vmem:[%s707_s20 + $0x28] sm:$0xff]  ;;  %v209_v13 = vld [vmem:[%s707_s20 + $0x20] sm:$0xff] }
  0x13   : > { %527 = vmatpush3.msra.mxu0 %v219_v3  ;;  %597 = vmatpush3.msra.mxu1 %v219_v3  ;;  %v208_v14 = vld [vmem:[%s707_s20 + $0x18] sm:$0xff]  ;;  %v207_v15 = vld [vmem:[%s707_s20 + $0x10] sm:$0xff]  ;;  %v206_v16 = vld [vmem:[%s707_s20 + $0x8] sm:$0xff] }
  0x14   : > { %528 = vmatprep.subr.mxu0 %v218_v4  ;;  %582 = vmatprep.subr.mxu1 %v218_v4  ;;  %v205_v17 = vld [vmem:[%s707_s20] sm:$0xff]  ;;  %v200_v23 = vld [vmem:[%s799_s0 + $0x58] sm:$0xff]  ;;  %v202_v27 = vld [vmem:[%s799_s0 + $0x68] sm:$0xff] }
  0x15   : > { %529 = vmatpush3.msra.mxu0 %v218_v4  ;;  %598 = vmatpush3.msra.mxu1 %v218_v4  ;;  %v201_v25 = vld [vmem:[%s799_s0 + $0x60] sm:$0xff]  ;;  %v195_v28 = vld [vmem:[%s799_s0 + $0x30] sm:$0xff]  ;;  %v196_v30 = vld [vmem:[%s799_s0 + $0x38] sm:$0xff] }
  0x16   : > { %530 = vmatprep.subr.mxu0 %v217_v5  ;;  %583 = vmatprep.subr.mxu1 %v217_v5  ;;  %v203_v29 = vld [vmem:[%s799_s0 + $0x70] sm:$0xff]  ;;  %v204_v31 = vld [vmem:[%s799_s0 + $0x78] sm:$0xff] }
  0x17   : > { %531 = vmatpush3.msra.mxu0 %v217_v5  ;;  %599 = vmatpush3.msra.mxu1 %v217_v5 }
  0x18   : > { %532 = vmatprep.subr.mxu0 %v216_v6  ;;  %584 = vmatprep.subr.mxu1 %v216_v6 }
  0x19   : > { %533 = vmatpush3.msra.mxu0 %v216_v6  ;;  %600 = vmatpush3.msra.mxu1 %v216_v6 }
  0x1a   : > { %534 = vmatprep.subr.mxu0 %v215_v7  ;;  %585 = vmatprep.subr.mxu1 %v215_v7 }
  0x1b   : > { %535 = vmatpush3.msra.mxu0 %v215_v7  ;;  %601 = vmatpush3.msra.mxu1 %v215_v7 }
  0x1c   : > { %536 = vmatprep.subr.mxu0 %v214_v8  ;;  %586 = vmatprep.subr.mxu1 %v214_v8 }
  0x1d   : > { %537 = vmatpush3.msra.mxu0 %v214_v8  ;;  %602 = vmatpush3.msra.mxu1 %v214_v8 }
  0x1e   : > { %538 = vmatprep.subr.mxu0 %v213_v9  ;;  %587 = vmatprep.subr.mxu1 %v213_v9 }
  0x1f   : > { %539 = vmatpush3.msra.mxu0 %v213_v9  ;;  %603 = vmatpush3.msra.mxu1 %v213_v9 }
  0x20   : > { %540 = vmatprep.subr.mxu0 %v212_v10  ;;  %588 = vmatprep.subr.mxu1 %v212_v10 }
  0x21   : > { %541 = vmatpush3.msra.mxu0 %v212_v10  ;;  %604 = vmatpush3.msra.mxu1 %v212_v10 }
  0x22   : > { %542 = vmatprep.subr.mxu0 %v211_v11  ;;  %589 = vmatprep.subr.mxu1 %v211_v11 }
  0x23   : > { %543 = vmatpush3.msra.mxu0 %v211_v11  ;;  %605 = vmatpush3.msra.mxu1 %v211_v11 }
  0x24   : > { %544 = vmatprep.subr.mxu0 %v210_v12  ;;  %590 = vmatprep.subr.mxu1 %v210_v12 }
  0x25   : > { %545 = vmatpush3.msra.mxu0 %v210_v12  ;;  %606 = vmatpush3.msra.mxu1 %v210_v12 }
  0x26   : > { %546 = vmatprep.subr.mxu0 %v209_v13  ;;  %591 = vmatprep.subr.mxu1 %v209_v13 }
  0x27   : > { %547 = vmatpush3.msra.mxu0 %v209_v13  ;;  %607 = vmatpush3.msra.mxu1 %v209_v13 }
  0x28   : > { %548 = vmatprep.subr.mxu0 %v208_v14  ;;  %592 = vmatprep.subr.mxu1 %v208_v14 }
  0x29   : > { %549 = vmatpush3.msra.mxu0 %v208_v14  ;;  %608 = vmatpush3.msra.mxu1 %v208_v14 }
  0x2a   : > { %550 = vmatprep.subr.mxu0 %v207_v15  ;;  %593 = vmatprep.subr.mxu1 %v207_v15 }
  0x2b   : > { %551 = vmatpush3.msra.mxu0 %v207_v15  ;;  %609 = vmatpush3.msra.mxu1 %v207_v15 }
  0x2c   : > { %552 = vmatprep.subr.mxu0 %v206_v16  ;;  %594 = vmatprep.subr.mxu1 %v206_v16 }
  0x2d   : > { %553 = vmatpush3.msra.mxu0 %v206_v16  ;;  %610 = vmatpush3.msra.mxu1 %v206_v16 }
  0x2e   : > { %554 = vmatprep.subr.mxu0 %v205_v17  ;;  %595 = vmatprep.subr.mxu1 %v205_v17 }
  0x2f   : > { %555 = vmatpush3.msra.mxu0 %v205_v17  ;;  %611 = vmatpush3.msra.mxu1 %v205_v17 }
  0x30   : > { %557 = vmatmul.mubr.f32.vlgmr.msra.gmra.mxu0 %v190_v18  ;;  %569 = vmatmul.mubr.f32.vlgmr.msra.gmra.mxu1 %v198_v19 }
  0x31   : > { %559 = vmatprep.mubr.f32.mxu0 %v191_v20  ;;  %571 = vmatprep.mubr.f32.mxu1 %v199_v21 }
  0x34   : > { %560 = vmatmul.mubr.f32.gmra.mxu0 %v192_v22  ;;  %572 = vmatmul.mubr.f32.gmra.mxu1 %v200_v23 }
  0x35   : > { %562 = vmatprep.mubr.f32.mxu0 %v193_v24  ;;  %574 = vmatprep.mubr.f32.mxu1 %v201_v25 }
  0x38   : > { %563 = vmatmul.mubr.f32.gmra.mxu0 %v194_v26  ;;  %575 = vmatmul.mubr.f32.gmra.mxu1 %v202_v27 }
  0x39   : > { %565 = vmatprep.mubr.f32.mxu0 %v195_v28  ;;  %577 = vmatprep.mubr.f32.mxu1 %v203_v29 }
  0x3c   : > { %566 = vmatmul.mubr.f32.gmra.mxu0 %v196_v30  ;;  %578 = vmatmul.mubr.f32.gmra.mxu1 %v204_v31 }
  0xf0   : > { %v558_v32 = vpop.f32.mrf.mxu0  ;;  %v570_v33 = vpop.f32.mrf.mxu1 }
  0xf1   : > { %367 = vst [vmem:[%s772_s28 + $0x8] sm:$0xff] %v558_v32  ;;  %375 = vst [vmem:[%s772_s28 + $0x48] sm:$0xff] %v570_v33 }
  0xf2   : > { %v287_v34 = vpop.f32.mrf.mxu0  ;;  %v327_v35 = vpop.f32.mrf.mxu1 }
  0xf3   : > { %366 = vst [vmem:[%s772_s28] sm:$0xff] %v287_v34  ;;  %374 = vst [vmem:[%s772_s28 + $0x40] sm:$0xff] %v327_v35 }
  0xf4   : > { %v561_v36 = vpop.f32.mrf.mxu0  ;;  %v573_v37 = vpop.f32.mrf.mxu1 }
  0xf5   : > { %369 = vst [vmem:[%s772_s28 + $0x18] sm:$0xff] %v561_v36  ;;  %377 = vst [vmem:[%s772_s28 + $0x58] sm:$0xff] %v573_v37 }
  0xf6   : > { %v297_v38 = vpop.f32.mrf.mxu0  ;;  %v337_v39 = vpop.f32.mrf.mxu1 }
  0xf7   : > { %368 = vst [vmem:[%s772_s28 + $0x10] sm:$0xff] %v297_v38  ;;  %376 = vst [vmem:[%s772_s28 + $0x50] sm:$0xff] %v337_v39 }
  0xf8   : > { %v564_v40 = vpop.f32.mrf.mxu0  ;;  %v576_v41 = vpop.f32.mrf.mxu1 }
  0xf9   : > { %371 = vst [vmem:[%s772_s28 + $0x28] sm:$0xff] %v564_v40  ;;  %379 = vst [vmem:[%s772_s28 + $0x68] sm:$0xff] %v576_v41 }
  0xfa   : > { %v307_v42 = vpop.f32.mrf.mxu0  ;;  %v347_v43 = vpop.f32.mrf.mxu1 }
  0xfb   : > { %370 = vst [vmem:[%s772_s28 + $0x20] sm:$0xff] %v307_v42  ;;  %378 = vst [vmem:[%s772_s28 + $0x60] sm:$0xff] %v347_v43 }
  0xfc   : > { %v567_v44 = vpop.f32.mrf.mxu0  ;;  %v579_v45 = vpop.f32.mrf.mxu1 }
  0xfd   : > { %373 = vst [vmem:[%s772_s28 + $0x38] sm:$0xff] %v567_v44  ;;  %381 = vst [vmem:[%s772_s28 + $0x78] sm:$0xff] %v579_v45 }
  0xfe   : > { %v317_v46 = vpop.f32.mrf.mxu0  ;;  %v357_v47 = vpop.f32.mrf.mxu1 }
  0xff   : > { %372 = vst [vmem:[%s772_s28 + $0x30] sm:$0xff] %v317_v46  ;;  %380 = vst [vmem:[%s772_s28 + $0x70] sm:$0xff] %v357_v47 }
 0x100 PF: > { %s12_s11 = sadd.s32 1, %s658_s11   ;;  %s802_s9 = smov %s654_s10 }
 0x101   : > { %p9_p5 = scmp.ge.s32.totalorder %s12_s11, 5   ;;  %s803_s10 = smov %s805_s12 }
 0x103   :  { %11 = sbr.rel (!%p9_p5) target bundleno = 2 (0x2), region = 61 }

// kernel: hgcn_forward.5
= control target key start
LH: loop header
LB: loop body
LE: loop exit
PB: predicated region body
PF: predicated region fallthrough
CT: control target
= control target key end

     0   :  { %s485_s0 = inlined_call_operand.vmem [shape: f32[3], index: 0, kind: input, shape index: {}]   ;;  %s486_s1 = inlined_call_operand.vmem [shape: f32[3,128,128], index: 1, kind: input, shape index: {}]   ;;  %s487_s2 = inlined_call_operand.vmem [shape: f32[128,128], index: 2, kind: output, shape index: {}]  }
   0x1   :  { %s7_s11 = sshll.u32 %s485_s0, 4  ;;  %s8_s11 = int_to_ptr.vmem [resolvable:$true] %s7_s11 }
   0x2   :  { %s206_s12 = scalar_lea.vmem %s8_s11, 16  ;;  %p211_p1 = scmp.lt.s32.totalorder %s8_s11, %s8_s11 }
   0x3   :  { %p207_p0 = scmp.ne.s32.totalorder %s8_s11, %s206_s12  ;;  %p212_p2 = scmp.lt.s32.totalorder %s206_s12, %s206_s12 }
   0x5   :  { %p213_p3 = por %p212_p2, %p211_p1 }
   0x7   :  { %p214_p4 = pnand %p213_p3, %p207_p0 }
   0x9   :  { %217 = shalt.err (!%p214_p4)  }
   0xa   :  { %s220_s13 = smov [#allocation3]  }
   0xb   :  { %10 = dma.vmem_to_smem %s8_s11, 16, %s220_s13, [#allocation2] }
   0xc   :  { %218 = dma.done.wait [#allocation2], 16 }
   0xd   :  { %219 = vsyncadd [#allocation2], 4294967280 }
   0xe   :  { %12 = sfence }
   0xf   :  { %s15_s14 = sld [smem:[#allocation3]]  ;;  %v16_v0 = vld [vmem:[%s486_s1] sm:$0xff]  ;;  %v17_v2 = vld [vmem:[%s486_s1 + $0x8] sm:$0xff]  ;;  %v18_v3 = vld [vmem:[%s486_s1 + $0x10] sm:$0xff] }
  0x10   :  { %s171_s15 = sld [smem:[#allocation3 + $0x1]]  ;;  %v172_v1 = vld [vmem:[%s486_s1 + $0x80] sm:$0xff]  ;;  %v173_v5 = vld [vmem:[%s486_s1 + $0x88] sm:$0xff]  ;;  %v174_v6 = vld [vmem:[%s486_s1 + $0x90] sm:$0xff] }
  0x11   :  { %s188_s16 = sld [smem:[#allocation3 + $0x2]]  ;;  %v189_v4 = vld [vmem:[%s486_s1 + $0x100] sm:$0xff]  ;;  %v190_v8 = vld [vmem:[%s486_s1 + $0x108] sm:$0xff]  ;;  %v191_v9 = vld [vmem:[%s486_s1 + $0x110] sm:$0xff] }
  0x12   :  { %v19_v10 = vld [vmem:[%s486_s1 + $0x18] sm:$0xff]  ;;  %v20_v21 = vld [vmem:[%s486_s1 + $0x20] sm:$0xff]  ;;  %v21_v32 = vld [vmem:[%s486_s1 + $0x28] sm:$0xff] }
  0x13   :  { %v175_v15 = vld [vmem:[%s486_s1 + $0x98] sm:$0xff]  ;;  %v176_v22 = vld [vmem:[%s486_s1 + $0xa0] sm:$0xff]  ;;  %v177_v33 = vld [vmem:[%s486_s1 + $0xa8] sm:$0xff] }
  0x14   :  { %v192_v16 = vld [vmem:[%s486_s1 + $0x118] sm:$0xff]  ;;  %v193_v23 = vld [vmem:[%s486_s1 + $0x120] sm:$0xff]  ;;  %v194_v34 = vld [vmem:[%s486_s1 + $0x128] sm:$0xff] }
  0x15   :  { %v260_v7 = vstv %s15_s14  ;;  %v22_v39 = vld [vmem:[%s486_s1 + $0x30] sm:$0xff]  ;;  %v23_v46 = vld [vmem:[%s486_s1 + $0x38] sm:$0xff]  ;;  %v24_v53 = vld [vmem:[%s486_s1 + $0x40] sm:$0xff] }
  0x16   :  { %v33_v11 = vmul.f32 %v260_v7, %v16_v0  ;;  %v272_v12 = vstv %s171_s15  ;;  %v34_v13 = vmul.f32 %v260_v7, %v17_v2  ;;  %v35_v14 = vmul.f32 %v260_v7, %v18_v3  ;;  %v178_v40 = vld [vmem:[%s486_s1 + $0xb0] sm:$0xff]  ;;  %v179_v47 = vld [vmem:[%s486_s1 + $0xb8] sm:$0xff]  ;;  %v180_v54 = vld [vmem:[%s486_s1 + $0xc0] sm:$0xff] }
  0x17   :  { %v68_v17 = vmul.f32 %v172_v1, %v272_v12  ;;  %v283_v18 = vstv %s188_s16  ;;  %v69_v19 = vmul.f32 %v173_v5, %v272_v12  ;;  %v70_v20 = vmul.f32 %v174_v6, %v272_v12  ;;  %v195_v41 = vld [vmem:[%s486_s1 + $0x130] sm:$0xff]  ;;  %v196_v52 = vld [vmem:[%s486_s1 + $0x138] sm:$0xff]  ;;  %v197_v59 = vld [vmem:[%s486_s1 + $0x140] sm:$0xff] }
  0x18   :  { %v119_v24 = vmul.f32 %v189_v4, %v283_v18  ;;  %v120_v25 = vmul.f32 %v190_v8, %v283_v18  ;;  %v121_v26 = vmul.f32 %v191_v9, %v283_v18  ;;  %v36_v27 = vmul.f32 %v260_v7, %v19_v10  ;;  %v25_v60 = vld [vmem:[%s486_s1 + $0x48] sm:$0xff]  ;;  %v26_v8 = vld [vmem:[%s486_s1 + $0x50] sm:$0xff] }
  0x19   :  { %v84_v28 = vadd.f32 %v68_v17, %v33_v11  ;;  %v85_v29 = vadd.f32 %v69_v19, %v34_v13  ;;  %v86_v30 = vadd.f32 %v70_v20, %v35_v14  ;;  %v71_v31 = vmul.f32 %v175_v15, %v272_v12  ;;  %v181_v1 = vld [vmem:[%s486_s1 + $0xc8] sm:$0xff]  ;;  %v182_v9 = vld [vmem:[%s486_s1 + $0xd0] sm:$0xff]  ;;  %v183_v17 = vld [vmem:[%s486_s1 + $0xd8] sm:$0xff] }
  0x1a   :  { %v122_v35 = vmul.f32 %v192_v16, %v283_v18  ;;  %v37_v36 = vmul.f32 %v260_v7, %v20_v21  ;;  %v72_v37 = vmul.f32 %v176_v22, %v272_v12  ;;  %v123_v38 = vmul.f32 %v193_v23, %v283_v18  ;;  %v198_v2 = vld [vmem:[%s486_s1 + $0x148] sm:$0xff]  ;;  %v199_v10 = vld [vmem:[%s486_s1 + $0x150] sm:$0xff]  ;;  %v27_v16 = vld [vmem:[%s486_s1 + $0x58] sm:$0xff] }
  0x1b   :  { %v135_v42 = vadd.f32 %v119_v24, %v84_v28  ;;  %v136_v43 = vadd.f32 %v120_v25, %v85_v29  ;;  %v137_v44 = vadd.f32 %v121_v26, %v86_v30  ;;  %v87_v45 = vadd.f32 %v71_v31, %v36_v27  ;;  %v200_v23 = vld [vmem:[%s486_s1 + $0x158] sm:$0xff]  ;;  %v28_v24 = vld [vmem:[%s486_s1 + $0x60] sm:$0xff]  ;;  %v29_v31 = vld [vmem:[%s486_s1 + $0x68] sm:$0xff] }
  0x1c   :  { %v88_v48 = vadd.f32 %v72_v37, %v37_v36  ;;  %v38_v49 = vmul.f32 %v260_v7, %v21_v32  ;;  %v73_v50 = vmul.f32 %v177_v33, %v272_v12  ;;  %v124_v51 = vmul.f32 %v194_v34, %v283_v18  ;;  %v184_v25 = vld [vmem:[%s486_s1 + $0xe0] sm:$0xff]  ;;  %v185_v36 = vld [vmem:[%s486_s1 + $0xe8] sm:$0xff] }
  0x1d   :  { %151 = vst [vmem:[%s487_s2] sm:$0xff] %v135_v42  ;;  %152 = vst [vmem:[%s487_s2 + $0x8] sm:$0xff] %v136_v43  ;;  %v138_v55 = vadd.f32 %v122_v35, %v87_v45  ;;  %v39_v56 = vmul.f32 %v260_v7, %v22_v39  ;;  %v74_v57 = vmul.f32 %v178_v40, %v272_v12  ;;  %v201_v30 = vld [vmem:[%s486_s1 + $0x160] sm:$0xff]  ;;  %v202_v37 = vld [vmem:[%s486_s1 + $0x168] sm:$0xff] }
  0x1e   :  { %153 = vst [vmem:[%s487_s2 + $0x10] sm:$0xff] %v137_v44  ;;  %v125_v58 = vmul.f32 %v195_v41, %v283_v18  ;;  %v139_v61 = vadd.f32 %v123_v38, %v88_v48  ;;  %v89_v62 = vadd.f32 %v73_v50, %v38_v49  ;;  %v40_v63 = vmul.f32 %v260_v7, %v23_v46  ;;  %v30_v42 = vld [vmem:[%s486_s1 + $0x70] sm:$0xff]  ;;  %v31_v49 = vld [vmem:[%s486_s1 + $0x78] sm:$0xff] }
  0x1f   :  { %v75_v0 = vmul.f32 %v179_v47, %v272_v12  ;;  %154 = vst [vmem:[%s487_s2 + $0x18] sm:$0xff] %v138_v55  ;;  %v90_v3 = vadd.f32 %v74_v57, %v39_v56  ;;  %v126_v4 = vmul.f32 %v196_v52, %v283_v18  ;;  %v41_v5 = vmul.f32 %v260_v7, %v24_v53  ;;  %v186_v43 = vld [vmem:[%s486_s1 + $0xf0] sm:$0xff]  ;;  %v187_v50 = vld [vmem:[%s486_s1 + $0xf8] sm:$0xff] }
  0x20   :  { %v76_v6 = vmul.f32 %v180_v54, %v272_v12  ;;  %155 = vst [vmem:[%s487_s2 + $0x20] sm:$0xff] %v139_v61  ;;  %v140_v11 = vadd.f32 %v124_v51, %v89_v62  ;;  %v127_v14 = vmul.f32 %v197_v59, %v283_v18  ;;  %v42_v15 = vmul.f32 %v260_v7, %v25_v60  ;;  %v203_v44 = vld [vmem:[%s486_s1 + $0x170] sm:$0xff]  ;;  %v204_v55 = vld [vmem:[%s486_s1 + $0x178] sm:$0xff] }
  0x21   :  { %v91_v13 = vadd.f32 %v75_v0, %v40_v63  ;;  %v141_v19 = vadd.f32 %v125_v58, %v90_v3  ;;  %v77_v21 = vmul.f32 %v181_v1, %v272_v12  ;;  %v128_v22 = vmul.f32 %v198_v2, %v283_v18 }
  0x22   :  { %v92_v20 = vadd.f32 %v76_v6, %v41_v5  ;;  %156 = vst [vmem:[%s487_s2 + $0x28] sm:$0xff] %v140_v11  ;;  %v43_v27 = vmul.f32 %v260_v7, %v26_v8  ;;  %v78_v28 = vmul.f32 %v182_v9, %v272_v12  ;;  %v129_v29 = vmul.f32 %v199_v10, %v283_v18 }
  0x23   :  { %v142_v26 = vadd.f32 %v126_v4, %v91_v13  ;;  %157 = vst [vmem:[%s487_s2 + $0x30] sm:$0xff] %v141_v19  ;;  %v93_v33 = vadd.f32 %v77_v21, %v42_v15  ;;  %v44_v34 = vmul.f32 %v260_v7, %v27_v16  ;;  %v79_v35 = vmul.f32 %v183_v17, %v272_v12 }
  0x24   :  { %v143_v32 = vadd.f32 %v127_v14, %v92_v20  ;;  %v94_v38 = vadd.f32 %v78_v28, %v43_v27  ;;  %v130_v39 = vmul.f32 %v200_v23, %v283_v18  ;;  %v45_v40 = vmul.f32 %v260_v7, %v28_v24 }
  0x25   :  { %158 = vst [vmem:[%s487_s2 + $0x38] sm:$0xff] %v142_v26  ;;  %v80_v41 = vmul.f32 %v184_v25, %v272_v12  ;;  %v144_v45 = vadd.f32 %v128_v22, %v93_v33  ;;  %v95_v46 = vadd.f32 %v79_v35, %v44_v34  ;;  %v131_v47 = vmul.f32 %v201_v30, %v283_v18 }
  0x26   :  { %159 = vst [vmem:[%s487_s2 + $0x40] sm:$0xff] %v143_v32  ;;  %v46_v48 = vmul.f32 %v260_v7, %v29_v31  ;;  %v145_v51 = vadd.f32 %v129_v29, %v94_v38  ;;  %v81_v53 = vmul.f32 %v185_v36, %v272_v12  ;;  %v132_v54 = vmul.f32 %v202_v37, %v283_v18 }
  0x27   :  { %v96_v52 = vadd.f32 %v80_v41, %v45_v40  ;;  %160 = vst [vmem:[%s487_s2 + $0x48] sm:$0xff] %v144_v45  ;;  %v146_v56 = vadd.f32 %v130_v39, %v95_v46  ;;  %v47_v57 = vmul.f32 %v260_v7, %v30_v42  ;;  %v82_v58 = vmul.f32 %v186_v43, %v272_v12 }
  0x28   :  { %v133_v59 = vmul.f32 %v203_v44, %v283_v18  ;;  %161 = vst [vmem:[%s487_s2 + $0x50] sm:$0xff] %v145_v51  ;;  %v97_v61 = vadd.f32 %v81_v53, %v46_v48  ;;  %v48_v62 = vmul.f32 %v260_v7, %v31_v49  ;;  %v83_v63 = vmul.f32 %v187_v50, %v272_v12 }
  0x29   :  { %v147_v60 = vadd.f32 %v131_v47, %v96_v52  ;;  %162 = vst [vmem:[%s487_s2 + $0x58] sm:$0xff] %v146_v56  ;;  %v98_v0 = vadd.f32 %v82_v58, %v47_v57  ;;  %v134_v1 = vmul.f32 %v204_v55, %v283_v18 }
  0x2a   :  { %v148_v2 = vadd.f32 %v132_v54, %v97_v61  ;;  %v99_v3 = vadd.f32 %v83_v63, %v48_v62 }
  0x2b   :  { %163 = vst [vmem:[%s487_s2 + $0x60] sm:$0xff] %v147_v60  ;;  %v149_v4 = vadd.f32 %v133_v59, %v98_v0 }
  0x2c   :  { %164 = vst [vmem:[%s487_s2 + $0x68] sm:$0xff] %v148_v2  ;;  %v150_v7 = vadd.f32 %v134_v1, %v99_v3 }
  0x2d   :  { %165 = vst [vmem:[%s487_s2 + $0x70] sm:$0xff] %v149_v4 }
  0x2e   :  { %166 = vst [vmem:[%s487_s2 + $0x78] sm:$0xff] %v150_v7 }

// kernel: hgcn_forward.4
= control target key start
LH: loop header
LB: loop body
LE: loop exit
PB: predicated region body
PF: predicated region fallthrough
CT: control target
= control target key end

     0   :  { %s1761_s0 = inlined_call_operand.vmem [shape: f32[3], index: 0, kind: input, shape index: {}]   ;;  %s1762_s1 = inlined_call_operand.vmem [shape: f32[3,128,128], index: 1, kind: input, shape index: {}]   ;;  %s1763_s2 = inlined_call_operand.vmem [shape: f32[3,128,128], index: 2, kind: input, shape index: {}]   ;;  %s1764_s3 = inlined_call_operand.vmem [shape: f32[3,1,128], index: 3, kind: input, shape index: {}]   ;;  %s1765_s4 = inlined_call_operand.vmem [shape: f32[128,128], index: 4, kind: input, shape index: {}]   ;;  %s1766_s5 = inlined_call_operand.vmem [shape: f32[1,128], index: 5, kind: input, shape index: {}]   ;;  %s1767_s6 = inlined_call_operand.vmem [shape: f32[1,128], index: 6, kind: input, shape index: {}]   ;;  %s1768_s7 = inlined_call_operand.vmem [shape: f32[3,128,128], index: 7, kind: output, shape index: {0}]   ;;  %s1769_s8 = inlined_call_operand.vmem [shape: f32[3,128,1], index: 8, kind: output, shape index: {1}]  }
   0x1   :  { %s14_s29 = sshll.u32 %s1761_s0, 4  ;;  %s15_s29 = int_to_ptr.vmem [resolvable:$true] %s14_s29 }
   0x2   :  { %s1403_s30 = scalar_lea.vmem %s15_s29, 16  ;;  %p1408_p1 = scmp.lt.s32.totalorder %s15_s29, %s15_s29 }
   0x3   :  { %p1404_p0 = scmp.ne.s32.totalorder %s15_s29, %s1403_s30  ;;  %p1409_p2 = scmp.lt.s32.totalorder %s1403_s30, %s1403_s30 }
   0x5   :  { %p1410_p3 = por %p1409_p2, %p1408_p1 }
   0x7   :  { %p1411_p4 = pnand %p1410_p3, %p1404_p0 }
   0x9   :  { %1414 = shalt.err (!%p1411_p4)  }
   0xa   :  { %s1441_s9 = smov [#allocation4]  }
   0xb   :  { %17 = dma.vmem_to_smem %s15_s29, 16, %s1441_s9, [#allocation3] }
   0xc   :  { %1427 = dma.done.wait [#allocation3], 16 }
   0xd   :  { %1428 = vsyncadd [#allocation3], 4294967280 }
   0xe   :  { %19 = sfence }
   0xf   :  { %s1490_s10 = smov 0   ;;  %s1492_s11 = smov 0  }
  0x10   :  { %s1494_s12 = smov 0  }
  0x11 LB: > { %s40_s0 = sadd.s32 1, %s1435_s11  ;;  %p1154_p5 = scmp.ge.s32.totalorder %s1439_s12, 1  ;;  %s1439_s12 = sphi %s1494_s12, %s25_s12   ;;  %s1435_s11 = sphi %s1492_s11, %s1771_s11   ;;  %s1431_s10 = sphi %s1490_s10, %s1770_s10  }
  0x12   : > { %p42_p6 = scmp.ge.s32.totalorder %s40_s0, 3  ;;  %p290_p7 = scmp.lt.s32.totalorder %s1439_s12, 4 }
  0x14   : > { %s1773_s0 = smov (%p42_p6, %s40_s0), 0  ;;  %p291_p8 = pnand %p1154_p5, %p290_p7 }
  0x15   : > { %s1161_s13 = sshll.u32 (!%p291_p8), %s1431_s10, 7  ;;  %p346_p9 = scmp.lt.s32.totalorder (!%p291_p8), %s1431_s10, 2 }
  0x16   : > { %294 = sbr.rel (%p291_p8) target bundleno = 644 (0x284), region = 44  ;;  %s1521_s20 = scalar_lea.vmem (!%p291_p8), %s1763_s2, %s1161_s13 }
  0x17   : > { %s633_s18 = sld [smem:[#allocation4 + %s1431_s10]] (!%p291_p8) }
  0x1b   : > { %v737_v0 = vld [vmem:[%s1765_s4 + $0x78] sm:$0xff]  ;;  %v736_v1 = vld [vmem:[%s1765_s4 + $0x70] sm:$0xff]  ;;  %s1526_s21 = scalar_select %p346_p9, %s1431_s10, 2  ;;  %v735_v4 = vld [vmem:[%s1765_s4 + $0x68] sm:$0xff] }
  0x1c   : > { %1290 = vmatprep.subr.mxu1 %v737_v0  ;;  %v420_v2 = vld [vmem:[%s1521_s20 + $0x78] sm:$0xff]  ;;  %v419_v3 = vld [vmem:[%s1521_s20 + $0x70] sm:$0xff]  ;;  %v418_v5 = vld [vmem:[%s1521_s20 + $0x68] sm:$0xff] }
  0x1d   : > { %1291 = vmatpush3.msra.mxu1 %v737_v0  ;;  %1234 = vmatprep.subr.mxu0 %v420_v2  ;;  %s1533_s24 = sshll.u32 %s1526_s21, 7  ;;  %v734_v6 = vld [vmem:[%s1765_s4 + $0x60] sm:$0xff]  ;;  %v733_v9 = vld [vmem:[%s1765_s4 + $0x58] sm:$0xff]  ;;  %v732_v11 = vld [vmem:[%s1765_s4 + $0x50] sm:$0xff]  ;;  %s360_s23 = scalar_lea.vmem %s1764_s3, %s1526_s21  ;;  %v1616_v50 = vstv %s633_s18 }
  0x1e   : > { %1292 = vmatprep.subr.mxu1 %v736_v1  ;;  %1235 = vmatpush3.msra.mxu0 %v420_v2  ;;  %s1542_s29 = scalar_lea.vmem %s1762_s1, %s1533_s24  ;;  %v417_v7 = vld [vmem:[%s1521_s20 + $0x60] sm:$0xff]  ;;  %v416_v10 = vld [vmem:[%s1521_s20 + $0x58] sm:$0xff]  ;;  %v415_v12 = vld [vmem:[%s1521_s20 + $0x50] sm:$0xff]  ;;  %s1625_s10 = scalar_lea.vmem %s1768_s7, %s1533_s24 }
  0x1f   : > { %1293 = vmatpush3.msra.mxu1 %v736_v1  ;;  %1236 = vmatprep.subr.mxu0 %v419_v3  ;;  %v437_v8 = vld [vmem:[%s1542_s29] sm:$0xff]  ;;  %v414_v13 = vld [vmem:[%s1521_s20 + $0x48] sm:$0xff]  ;;  %v729_v17 = vld [vmem:[%s1765_s4 + $0x38] sm:$0xff]  ;;  %s1718_s13 = scalar_lea.vmem %s1769_s8, %s1533_s24 }
  0x20   : > { %1294 = vmatprep.subr.mxu1 %v735_v4  ;;  %1237 = vmatpush3.msra.mxu0 %v419_v3  ;;  %v731_v14 = vld [vmem:[%s1765_s4 + $0x48] sm:$0xff]  ;;  %v730_v15 = vld [vmem:[%s1765_s4 + $0x40] sm:$0xff]  ;;  %v412_v18 = vld [vmem:[%s1521_s20 + $0x38] sm:$0xff] }
  0x21   : > { %1295 = vmatpush3.msra.mxu1 %v735_v4  ;;  %1238 = vmatprep.subr.mxu0 %v418_v5  ;;  %v413_v16 = vld [vmem:[%s1521_s20 + $0x40] sm:$0xff]  ;;  %v728_v19 = vld [vmem:[%s1765_s4 + $0x30] sm:$0xff]  ;;  %v727_v21 = vld [vmem:[%s1765_s4 + $0x28] sm:$0xff] }
  0x22   : > { %1296 = vmatprep.subr.mxu1 %v734_v6  ;;  %1239 = vmatpush3.msra.mxu0 %v418_v5  ;;  %v411_v20 = vld [vmem:[%s1521_s20 + $0x30] sm:$0xff]  ;;  %v410_v22 = vld [vmem:[%s1521_s20 + $0x28] sm:$0xff]  ;;  %v726_v23 = vld [vmem:[%s1765_s4 + $0x20] sm:$0xff] }
  0x23   : > { %1266 = vmatprep.mubr.f32.mxu0 %v437_v8  ;;  %1240 = vmatprep.subr.mxu0 %v417_v7  ;;  %v409_v24 = vld [vmem:[%s1521_s20 + $0x20] sm:$0xff]  ;;  %v408_v25 = vld [vmem:[%s1521_s20 + $0x18] sm:$0xff]  ;;  %v407_v26 = vld [vmem:[%s1521_s20 + $0x10] sm:$0xff] }
  0x24   : > { %1297 = vmatpush3.msra.mxu1 %v734_v6  ;;  %1241 = vmatpush3.msra.mxu0 %v417_v7  ;;  %v406_v27 = vld [vmem:[%s1521_s20 + $0x8] sm:$0xff]  ;;  %v405_v28 = vld [vmem:[%s1521_s20] sm:$0xff]  ;;  %v439_v30 = vld [vmem:[%s1542_s29 + $0x10] sm:$0xff] }
  0x25   : > { %1298 = vmatprep.subr.mxu1 %v733_v9  ;;  %1242 = vmatprep.subr.mxu0 %v416_v10  ;;  %v438_v29 = vld [vmem:[%s1542_s29 + $0x8] sm:$0xff]  ;;  %v440_v31 = vld [vmem:[%s1542_s29 + $0x18] sm:$0xff]  ;;  %v441_v32 = vld [vmem:[%s1542_s29 + $0x20] sm:$0xff] }
  0x26   : > { %1299 = vmatpush3.msra.mxu1 %v733_v9  ;;  %1243 = vmatpush3.msra.mxu0 %v416_v10  ;;  %v442_v33 = vld [vmem:[%s1542_s29 + $0x28] sm:$0xff]  ;;  %v443_v34 = vld [vmem:[%s1542_s29 + $0x30] sm:$0xff]  ;;  %v444_v35 = vld [vmem:[%s1542_s29 + $0x38] sm:$0xff] }
  0x27   : > { %1300 = vmatprep.subr.mxu1 %v732_v11  ;;  %1244 = vmatprep.subr.mxu0 %v415_v12  ;;  %v445_v36 = vld [vmem:[%s1542_s29 + $0x40] sm:$0xff]  ;;  %v446_v37 = vld [vmem:[%s1542_s29 + $0x48] sm:$0xff]  ;;  %v447_v38 = vld [vmem:[%s1542_s29 + $0x50] sm:$0xff] }
  0x28   : > { %1301 = vmatpush3.msra.mxu1 %v732_v11  ;;  %1245 = vmatpush3.msra.mxu0 %v415_v12  ;;  %v448_v39 = vld [vmem:[%s1542_s29 + $0x58] sm:$0xff]  ;;  %v449_v40 = vld [vmem:[%s1542_s29 + $0x60] sm:$0xff]  ;;  %v450_v41 = vld [vmem:[%s1542_s29 + $0x68] sm:$0xff] }
  0x29   : > { %1302 = vmatprep.subr.mxu1 %v731_v14  ;;  %1246 = vmatprep.subr.mxu0 %v414_v13  ;;  %v451_v42 = vld [vmem:[%s1542_s29 + $0x70] sm:$0xff]  ;;  %v452_v43 = vld [vmem:[%s1542_s29 + $0x78] sm:$0xff]  ;;  %v723_v46 = vld [vmem:[%s1765_s4 + $0x8] sm:$0xff] }
  0x2a   : > { %1303 = vmatpush3.msra.mxu1 %v731_v14  ;;  %1247 = vmatpush3.msra.mxu0 %v414_v13  ;;  %v725_v44 = vld [vmem:[%s1765_s4 + $0x18] sm:$0xff]  ;;  %v724_v45 = vld [vmem:[%s1765_s4 + $0x10] sm:$0xff]  ;;  %v722_v47 = vld [vmem:[%s1765_s4] sm:$0xff] }
  0x2b   : > { %1304 = vmatprep.subr.mxu1 %v730_v15  ;;  %1248 = vmatprep.subr.mxu0 %v413_v16  ;;  %v1614_v48 = vld [vmem:[%s360_s23] ss:$0 sm:$0xff] }
  0x2c   : > { %1305 = vmatpush3.msra.mxu1 %v730_v15  ;;  %1249 = vmatpush3.msra.mxu0 %v413_v16 }
  0x2d   : > { %1306 = vmatprep.subr.mxu1 %v729_v17  ;;  %1250 = vmatprep.subr.mxu0 %v412_v18 }
  0x2e   : > { %1307 = vmatpush3.msra.mxu1 %v729_v17  ;;  %1251 = vmatpush3.msra.mxu0 %v412_v18 }
  0x2f   : > { %1308 = vmatprep.subr.mxu1 %v728_v19  ;;  %1252 = vmatprep.subr.mxu0 %v411_v20 }
  0x30   : > { %1309 = vmatpush3.msra.mxu1 %v728_v19  ;;  %1253 = vmatpush3.msra.mxu0 %v411_v20 }
  0x31   : > { %1310 = vmatprep.subr.mxu1 %v727_v21  ;;  %1254 = vmatprep.subr.mxu0 %v410_v22 }
  0x32   : > { %1311 = vmatpush3.msra.mxu1 %v727_v21  ;;  %1255 = vmatpush3.msra.mxu0 %v410_v22 }
  0x33   : > { %1312 = vmatprep.subr.mxu1 %v726_v23  ;;  %1256 = vmatprep.subr.mxu0 %v409_v24 }
  0x34   : > { %1313 = vmatpush3.msra.mxu1 %v726_v23  ;;  %1257 = vmatpush3.msra.mxu0 %v409_v24 }
  0x35   : > { %1258 = vmatprep.subr.mxu0 %v408_v25  ;;  %1314 = vmatprep.subr.mxu1 %v725_v44 }
  0x36   : > { %1259 = vmatpush3.msra.mxu0 %v408_v25  ;;  %1315 = vmatpush3.msra.mxu1 %v725_v44 }
  0x37   : > { %1260 = vmatprep.subr.mxu0 %v407_v26  ;;  %1316 = vmatprep.subr.mxu1 %v724_v45 }
  0x38   : > { %1261 = vmatpush3.msra.mxu0 %v407_v26  ;;  %1317 = vmatpush3.msra.mxu1 %v724_v45 }
  0x39   : > { %1262 = vmatprep.subr.mxu0 %v406_v27  ;;  %1318 = vmatprep.subr.mxu1 %v723_v46 }
  0x3a   : > { %1263 = vmatpush3.msra.mxu0 %v406_v27  ;;  %1319 = vmatpush3.msra.mxu1 %v723_v46 }
  0x3b   : > { %1264 = vmatprep.subr.mxu0 %v405_v28  ;;  %1320 = vmatprep.subr.mxu1 %v722_v47 }
  0x3c   : > { %1265 = vmatpush3.msra.mxu0 %v405_v28  ;;  %1321 = vmatpush3.msra.mxu1 %v722_v47 }
  0x3d   : > { %1267 = vmatmul.mubr.f32.vlgmr.msra.gmra.mxu0 %v438_v29 }
  0x3e   : > { %1269 = vmatprep.mubr.f32.mxu0 %v439_v30 }
  0x41   : > { %1270 = vmatmul.mubr.f32.gmra.mxu0 %v440_v31 }
  0x42   : > { %1272 = vmatprep.mubr.f32.mxu0 %v441_v32 }
  0x45   : > { %1273 = vmatmul.mubr.f32.gmra.mxu0 %v442_v33 }
  0x46   : > { %1275 = vmatprep.mubr.f32.mxu0 %v443_v34 }
  0x49   : > { %1276 = vmatmul.mubr.f32.gmra.mxu0 %v444_v35 }
  0x4a   : > { %1278 = vmatprep.mubr.f32.mxu0 %v445_v36 }
  0x4d   : > { %1279 = vmatmul.mubr.f32.gmra.mxu0 %v446_v37 }
  0x4e   : > { %1281 = vmatprep.mubr.f32.mxu0 %v447_v38 }
  0x51   : > { %1282 = vmatmul.mubr.f32.gmra.mxu0 %v448_v39 }
  0x52   : > { %1284 = vmatprep.mubr.f32.mxu0 %v449_v40 }
  0x55   : > { %1285 = vmatmul.mubr.f32.gmra.mxu0 %v450_v41 }
  0x56   : > { %1287 = vmatprep.mubr.f32.mxu0 %v451_v42 }
  0x59   : > { %1288 = vmatmul.mubr.f32.gmra.mxu0 %v452_v43 }
  0xfd   : > { %v1268_v49 = vpop.f32.mrf.mxu0 }
  0xfe   : > { %v658_v51 = vadd.f32 %v1268_v49, %v1614_v48 }
  0xff   : > { %v519_v52 = vpop.f32.mrf.mxu0 }
 0x100   : > { %v691_v53 = vmul.f32 %v1616_v50, %v658_v51  ;;  %v657_v54 = vadd.f32 %v1614_v48, %v519_v52  ;;  %vm674_vm0 = vcmp.gt.f32.partialorder %v658_v51, 0.0  ;;  %v1675_v52 = vld [vmem:[%s1766_s5] ss:$0 sm:$0xff] }
 0x101   : > { %v1271_v55 = vpop.f32.mrf.mxu0 }
 0x102   : > { %v660_v56 = vadd.f32 %v1271_v55, %v1614_v48  ;;  %vm673_vm1 = vcmp.gt.f32.partialorder %v657_v54, 0.0  ;;  %v690_v57 = vmul.f32 %v1616_v50, %v657_v54  ;;  %v707_v58 = vsel %vm674_vm0, %v658_v51, %v691_v53 }
 0x103   : > { %v529_v59 = vpop.f32.mrf.mxu0  ;;  %979 = vst [vmem:[%s1625_s10 + $0x8] sm:$0xff] %v707_v58  ;;  %vm961_vm0 = vcmask 7168  }
 0x104   : > { %v693_v60 = vmul.f32 %v1616_v50, %v660_v56  ;;  %v659_v61 = vadd.f32 %v1614_v48, %v529_v59  ;;  %v706_v62 = vsel %vm673_vm1, %v657_v54, %v690_v57  ;;  %vm676_vm2 = vcmp.gt.f32.partialorder %v660_v56, 0.0 }
 0x105   : > { %v1274_v63 = vpop.f32.mrf.mxu0  ;;  %1322 = vmatprep.mubr.f32.mxu1 %v706_v62  ;;  %978 = vst [vmem:[%s1625_s10] sm:$0xff] %v706_v62 }
 0x106   : > { %v692_v0 = vmul.f32 %v1616_v50, %v659_v61  ;;  %v662_v1 = vadd.f32 %v1274_v63, %v1614_v48  ;;  %1323 = vmatmul.mubr.f32.vlgmr.msra.gmra.mxu1 %v707_v58  ;;  %vm675_vm3 = vcmp.gt.f32.partialorder %v659_v61, 0.0  ;;  %v709_v2 = vsel %vm676_vm2, %v660_v56, %v693_v60 }
 0x107   : > { %v539_v3 = vpop.f32.mrf.mxu0  ;;  %981 = vst [vmem:[%s1625_s10 + $0x18] sm:$0xff] %v709_v2 }
 0x108   : > { %v695_v4 = vmul.f32 %v1616_v50, %v662_v1  ;;  %v661_v5 = vadd.f32 %v1614_v48, %v539_v3  ;;  %v708_v6 = vsel %vm675_vm3, %v659_v61, %v692_v0  ;;  %vm678_vm4 = vcmp.gt.f32.partialorder %v662_v1, 0.0 }
 0x109   : > { %v1277_v7 = vpop.f32.mrf.mxu0  ;;  %1325 = vmatprep.mubr.f32.mxu1 %v708_v6  ;;  %980 = vst [vmem:[%s1625_s10 + $0x10] sm:$0xff] %v708_v6 }
 0x10a   : > { %v694_v8 = vmul.f32 %v1616_v50, %v661_v5  ;;  %v664_v9 = vadd.f32 %v1277_v7, %v1614_v48  ;;  %1326 = vmatmul.mubr.f32.gmra.mxu1 %v709_v2  ;;  %vm677_vm5 = vcmp.gt.f32.partialorder %v661_v5, 0.0  ;;  %v711_v10 = vsel %vm678_vm4, %v662_v1, %v695_v4  ;;  %v1687_v2 = vld [vmem:[%s1767_s6] ss:$0 sm:$0xff] }
 0x10b   : > { %v549_v11 = vpop.f32.mrf.mxu0  ;;  %983 = vst [vmem:[%s1625_s10 + $0x28] sm:$0xff] %v711_v10 }
 0x10c   : > { %v697_v12 = vmul.f32 %v1616_v50, %v664_v9  ;;  %v663_v13 = vadd.f32 %v1614_v48, %v549_v11  ;;  %v710_v14 = vsel %vm677_vm5, %v661_v5, %v694_v8  ;;  %vm680_vm6 = vcmp.gt.f32.partialorder %v664_v9, 0.0 }
 0x10d   : > { %v1280_v15 = vpop.f32.mrf.mxu0  ;;  %1328 = vmatprep.mubr.f32.mxu1 %v710_v14  ;;  %982 = vst [vmem:[%s1625_s10 + $0x20] sm:$0xff] %v710_v14 }
 0x10e   : > { %v696_v16 = vmul.f32 %v1616_v50, %v663_v13  ;;  %v666_v17 = vadd.f32 %v1280_v15, %v1614_v48  ;;  %1329 = vmatmul.mubr.f32.gmra.mxu1 %v711_v10  ;;  %vm679_vm7 = vcmp.gt.f32.partialorder %v663_v13, 0.0  ;;  %v713_v18 = vsel %vm680_vm6, %v664_v9, %v697_v12 }
 0x10f   : > { %v559_v19 = vpop.f32.mrf.mxu0  ;;  %985 = vst [vmem:[%s1625_s10 + $0x38] sm:$0xff] %v713_v18 }
 0x110   : > { %v699_v20 = vmul.f32 %v1616_v50, %v666_v17  ;;  %v665_v21 = vadd.f32 %v1614_v48, %v559_v19  ;;  %v712_v22 = vsel %vm679_vm7, %v663_v13, %v696_v16  ;;  %vm682_vm8 = vcmp.gt.f32.partialorder %v666_v17, 0.0 }
 0x111   : > { %v1283_v23 = vpop.f32.mrf.mxu0  ;;  %1331 = vmatprep.mubr.f32.mxu1 %v712_v22  ;;  %984 = vst [vmem:[%s1625_s10 + $0x30] sm:$0xff] %v712_v22 }
 0x112   : > { %v698_v24 = vmul.f32 %v1616_v50, %v665_v21  ;;  %v668_v25 = vadd.f32 %v1283_v23, %v1614_v48  ;;  %1332 = vmatmul.mubr.f32.gmra.mxu1 %v713_v18  ;;  %vm681_vm9 = vcmp.gt.f32.partialorder %v665_v21, 0.0  ;;  %v715_v26 = vsel %vm682_vm8, %v666_v17, %v699_v20 }
 0x113   : > { %v569_v27 = vpop.f32.mrf.mxu0  ;;  %987 = vst [vmem:[%s1625_s10 + $0x48] sm:$0xff] %v715_v26 }
 0x114   : > { %v701_v28 = vmul.f32 %v1616_v50, %v668_v25  ;;  %v667_v29 = vadd.f32 %v1614_v48, %v569_v27  ;;  %v714_v30 = vsel %vm681_vm9, %v665_v21, %v698_v24  ;;  %vm684_vm10 = vcmp.gt.f32.partialorder %v668_v25, 0.0 }
 0x115   : > { %v1286_v31 = vpop.f32.mrf.mxu0  ;;  %1334 = vmatprep.mubr.f32.mxu1 %v714_v30  ;;  %986 = vst [vmem:[%s1625_s10 + $0x40] sm:$0xff] %v714_v30 }
 0x116   : > { %v700_v32 = vmul.f32 %v1616_v50, %v667_v29  ;;  %v670_v33 = vadd.f32 %v1286_v31, %v1614_v48  ;;  %1335 = vmatmul.mubr.f32.gmra.mxu1 %v715_v26  ;;  %vm683_vm11 = vcmp.gt.f32.partialorder %v667_v29, 0.0  ;;  %v717_v34 = vsel %vm684_vm10, %v668_v25, %v701_v28 }
 0x117   : > { %v579_v35 = vpop.f32.mrf.mxu0  ;;  %989 = vst [vmem:[%s1625_s10 + $0x58] sm:$0xff] %v717_v34 }
 0x118   : > { %v703_v36 = vmul.f32 %v1616_v50, %v670_v33  ;;  %v669_v37 = vadd.f32 %v1614_v48, %v579_v35  ;;  %v716_v38 = vsel %vm683_vm11, %v667_v29, %v700_v32  ;;  %vm686_vm12 = vcmp.gt.f32.partialorder %v670_v33, 0.0 }
 0x119   : > { %v1289_v39 = vpop.f32.mrf.mxu0  ;;  %1337 = vmatprep.mubr.f32.mxu1 %v716_v38  ;;  %988 = vst [vmem:[%s1625_s10 + $0x50] sm:$0xff] %v716_v38 }
 0x11a   : > { %v702_v40 = vmul.f32 %v1616_v50, %v669_v37  ;;  %v672_v41 = vadd.f32 %v1289_v39, %v1614_v48  ;;  %1338 = vmatmul.mubr.f32.gmra.mxu1 %v717_v34  ;;  %vm685_vm13 = vcmp.gt.f32.partialorder %v669_v37, 0.0  ;;  %v719_v42 = vsel %vm686_vm12, %v670_v33, %v703_v36 }
 0x11b   : > { %v589_v43 = vpop.f32.mrf.mxu0  ;;  %991 = vst [vmem:[%s1625_s10 + $0x68] sm:$0xff] %v719_v42 }
 0x11c   : > { %v705_v44 = vmul.f32 %v1616_v50, %v672_v41  ;;  %v671_v45 = vadd.f32 %v1614_v48, %v589_v43  ;;  %v718_v46 = vsel %vm685_vm13, %v669_v37, %v702_v40  ;;  %vm688_vm14 = vcmp.gt.f32.partialorder %v672_v41, 0.0 }
 0x11d   : > { %1340 = vmatprep.mubr.f32.mxu1 %v718_v46  ;;  %990 = vst [vmem:[%s1625_s10 + $0x60] sm:$0xff] %v718_v46 }
 0x11e   : > { %v704_v47 = vmul.f32 %v1616_v50, %v671_v45  ;;  %1341 = vmatmul.mubr.f32.gmra.mxu1 %v719_v42  ;;  %vm687_vm15 = vcmp.gt.f32.partialorder %v671_v45, 0.0  ;;  %v721_v49 = vsel %vm688_vm14, %v672_v41, %v705_v44 }
 0x11f   : > { %993 = vst [vmem:[%s1625_s10 + $0x78] sm:$0xff] %v721_v49 }
 0x120   : > { %v720_v51 = vsel %vm687_vm15, %v671_v45, %v704_v47 }
 0x121   : > { %1343 = vmatprep.mubr.f32.mxu1 %v720_v51  ;;  %992 = vst [vmem:[%s1625_s10 + $0x70] sm:$0xff] %v720_v51 }
 0x122   : > { %1344 = vmatmul.mubr.f32.gmra.mxu1 %v721_v49 }
 0x1c6   : > { %v1324_v48 = vpop.f32.mrf.mxu1 }
 0x1c7   : > { %v817_v53 = vadd.f32 %v1324_v48, %v1675_v52 }
 0x1c8   : > { %v811_v54 = vpop.f32.mrf.mxu1 }
 0x1c9   : > { %1371 = vtanh.f32 %v817_v53  ;;  %v812_v50 = vadd.f32 %v1675_v52, %v811_v54 }
 0x1ca   : > { %v1327_v55 = vpop.f32.mrf.mxu1 }
 0x1cb   : > { %1373 = vtanh.f32 %v812_v50  ;;  %v827_v56 = vadd.f32 %v1327_v55, %v1675_v52 }
 0x1cc   : > { %v821_v57 = vpop.f32.mrf.mxu1 }
 0x1cd   : > { %1375 = vtanh.f32 %v827_v56  ;;  %v822_v58 = vadd.f32 %v1675_v52, %v821_v57 }
 0x1ce   : > { %v1330_v59 = vpop.f32.mrf.mxu1 }
 0x1cf   : > { %1377 = vtanh.f32 %v822_v58  ;;  %v837_v60 = vadd.f32 %v1330_v59, %v1675_v52 }
 0x1d0   : > { %v831_v61 = vpop.f32.mrf.mxu1 }
 0x1d1   : > { %v832_v62 = vadd.f32 %v1675_v52, %v831_v61  ;;  %1379 = vtanh.f32 %v837_v60 }
 0x1d2   : > { %v1333_v63 = vpop.f32.mrf.mxu1 }
 0x1d3   : > { %1381 = vtanh.f32 %v832_v62  ;;  %v847_v0 = vadd.f32 %v1333_v63, %v1675_v52 }
 0x1d4   : > { %v841_v1 = vpop.f32.mrf.mxu1 }
 0x1d5   : > { %v842_v3 = vadd.f32 %v1675_v52, %v841_v1  ;;  %1383 = vtanh.f32 %v847_v0 }
 0x1d6   : > { %v1372_v4 = vpop.eup %1371  ;;  %v1336_v5 = vpop.f32.mrf.mxu1 }
 0x1d7   : > { %1385 = vtanh.f32 %v842_v3  ;;  %v857_v6 = vadd.f32 %v1336_v5, %v1675_v52  ;;  %v914_v7 = vmul.f32 %v1372_v4, %v1687_v2 }
 0x1d8   : > { %v1374_v8 = vpop.eup %1373  ;;  %v851_v9 = vpop.f32.mrf.mxu1 }
 0x1d9   : > { %v852_v10 = vadd.f32 %v1675_v52, %v851_v9  ;;  %931 = vadd.xlane.f32.xlu0 %v914_v7  ;;  %1387 = vtanh.f32 %v857_v6  ;;  %v913_v14 = vmul.f32 %v1374_v8, %v1687_v2 }
 0x1da   : > { %v1376_v11 = vpop.eup %1375  ;;  %v1339_v12 = vpop.f32.mrf.mxu1 }
 0x1db   : > { %1389 = vtanh.f32 %v852_v10  ;;  %v867_v13 = vadd.f32 %v1339_v12, %v1675_v52  ;;  %v916_v15 = vmul.f32 %v1376_v11, %v1687_v2 }
 0x1dc   : > { %v1378_v16 = vpop.eup %1377  ;;  %v861_v17 = vpop.f32.mrf.mxu1 }
 0x1dd   : > { %v862_v18 = vadd.f32 %v1675_v52, %v861_v17  ;;  %929 = vadd.xlane.f32.xlu0 %v913_v14  ;;  %935 = vadd.xlane.f32.xlu1 %v916_v15  ;;  %1391 = vtanh.f32 %v867_v13  ;;  %v915_v22 = vmul.f32 %v1378_v16, %v1687_v2 }
 0x1de   : > { %v1342_v19 = vpop.f32.mrf.mxu1  ;;  %v1380_v20 = vpop.eup %1379 }
 0x1df   : > { %1393 = vtanh.f32 %v862_v18  ;;  %v877_v21 = vadd.f32 %v1342_v19, %v1675_v52  ;;  %v918_v30 = vmul.f32 %v1380_v20, %v1687_v2 }
 0x1e0   : > { %v1382_v23 = vpop.eup %1381  ;;  %v871_v24 = vpop.f32.mrf.mxu1 }
 0x1e1   : > { %v872_v25 = vadd.f32 %v1675_v52, %v871_v24  ;;  %933 = vadd.xlane.f32.xlu1 %v915_v22  ;;  %v917_v26 = vmul.f32 %v1382_v23, %v1687_v2  ;;  %1395 = vtanh.f32 %v877_v21 }
 0x1e2   : > { %v1345_v27 = vpop.f32.mrf.mxu1  ;;  %v1384_v28 = vpop.eup %1383 }
 0x1e3   : > { %1397 = vtanh.f32 %v872_v25  ;;  %v887_v29 = vadd.f32 %v1345_v27, %v1675_v52  ;;  %937 = vadd.xlane.f32.xlu0 %v917_v26  ;;  %v920_v36 = vmul.f32 %v1384_v28, %v1687_v2 }
 0x1e4   : > { %v1386_v31 = vpop.eup %1385  ;;  %v881_v32 = vpop.f32.mrf.mxu1 }
 0x1e5   : > { %v882_v33 = vadd.f32 %v1675_v52, %v881_v32  ;;  %939 = vadd.xlane.f32.xlu1 %v918_v30  ;;  %v919_v34 = vmul.f32 %v1386_v31, %v1687_v2  ;;  %1399 = vtanh.f32 %v887_v29 }
 0x1e6   : > { %v1388_v35 = vpop.eup %1387 }
 0x1e7   : > { %1401 = vtanh.f32 %v882_v33  ;;  %941 = vadd.xlane.f32.xlu0 %v919_v34  ;;  %v922_v40 = vmul.f32 %v1388_v35, %v1687_v2 }
 0x1e8   : > { %v1390_v37 = vpop.eup %1389 }
 0x1e9   : > { %943 = vadd.xlane.f32.xlu1 %v920_v36  ;;  %v921_v38 = vmul.f32 %v1390_v37, %v1687_v2 }
 0x1ea   : > { %v1392_v39 = vpop.eup %1391 }
 0x1eb   : > { %945 = vadd.xlane.f32.xlu0 %v921_v38  ;;  %v924_v44 = vmul.f32 %v1392_v39, %v1687_v2 }
 0x1ec   : > { %v1394_v41 = vpop.eup %1393 }
 0x1ed   : > { %947 = vadd.xlane.f32.xlu1 %v922_v40  ;;  %v923_v42 = vmul.f32 %v1394_v41, %v1687_v2 }
 0x1ee   : > { %v1396_v43 = vpop.eup %1395 }
 0x1ef   : > { %949 = vadd.xlane.f32.xlu0 %v923_v42  ;;  %v926_v49 = vmul.f32 %v1396_v43, %v1687_v2 }
 0x1f0   : > { %v1398_v45 = vpop.eup %1397 }
 0x1f1   : > { %951 = vadd.xlane.f32.xlu1 %v924_v44  ;;  %v925_v46 = vmul.f32 %v1398_v45, %v1687_v2 }
 0x1f2   : > { %v1400_v47 = vpop.eup %1399 }
 0x1f3   : > { %953 = vadd.xlane.f32.xlu0 %v925_v46  ;;  %v928_v48 = vmul.f32 %v1400_v47, %v1687_v2 }
 0x1f4   : > { %v1402_v51 = vpop.eup %1401 }
 0x1f5   : > { %955 = vadd.xlane.f32.xlu1 %v926_v49  ;;  %v927_v52 = vmul.f32 %v1402_v51, %v1687_v2 }
 0x1f7   : > { %957 = vadd.xlane.f32.xlu0 %v927_v52 }
 0x1f9   : > { %959 = vadd.xlane.f32.xlu1 %v928_v48 }
 0x262   : > { %v932_v53 = vpop.xlane.xlu0 %931 }
 0x263   : > { %963 = vst.msk [vmem:[%s1718_s13 + $0x8] sm:$0xff] %vm961_vm0, %v932_v53 }
 0x266   : > { %v930_v54 = vpop.xlane.xlu0 %929  ;;  %v936_v50 = vpop.xlane.xlu1 %935 }
 0x267   : > { %962 = vst.msk [vmem:[%s1718_s13] sm:$0xff] %vm961_vm0, %v930_v54  ;;  %965 = vst.msk [vmem:[%s1718_s13 + $0x18] sm:$0xff] %vm961_vm0, %v936_v50 }
 0x26a   : > { %v934_v55 = vpop.xlane.xlu1 %933 }
 0x26b   : > { %964 = vst.msk [vmem:[%s1718_s13 + $0x10] sm:$0xff] %vm961_vm0, %v934_v55 }
 0x26c   : > { %v938_v56 = vpop.xlane.xlu0 %937 }
 0x26d   : > { %966 = vst.msk [vmem:[%s1718_s13 + $0x20] sm:$0xff] %vm961_vm0, %v938_v56 }
 0x26e   : > { %v940_v57 = vpop.xlane.xlu1 %939 }
 0x26f   : > { %967 = vst.msk [vmem:[%s1718_s13 + $0x28] sm:$0xff] %vm961_vm0, %v940_v57 }
 0x270   : > { %v942_v58 = vpop.xlane.xlu0 %941 }
 0x271   : > { %968 = vst.msk [vmem:[%s1718_s13 + $0x30] sm:$0xff] %vm961_vm0, %v942_v58 }
 0x272   : > { %v944_v59 = vpop.xlane.xlu1 %943 }
 0x273   : > { %969 = vst.msk [vmem:[%s1718_s13 + $0x38] sm:$0xff] %vm961_vm0, %v944_v59 }
 0x274   : > { %v946_v60 = vpop.xlane.xlu0 %945 }
 0x275   : > { %970 = vst.msk [vmem:[%s1718_s13 + $0x40] sm:$0xff] %vm961_vm0, %v946_v60 }
 0x276   : > { %v948_v61 = vpop.xlane.xlu1 %947 }
 0x277   : > { %971 = vst.msk [vmem:[%s1718_s13 + $0x48] sm:$0xff] %vm961_vm0, %v948_v61 }
 0x278   : > { %v950_v62 = vpop.xlane.xlu0 %949 }
 0x279   : > { %972 = vst.msk [vmem:[%s1718_s13 + $0x50] sm:$0xff] %vm961_vm0, %v950_v62 }
 0x27a   : > { %v952_v63 = vpop.xlane.xlu1 %951 }
 0x27b   : > { %973 = vst.msk [vmem:[%s1718_s13 + $0x58] sm:$0xff] %vm961_vm0, %v952_v63 }
 0x27c   : > { %v954_v0 = vpop.xlane.xlu0 %953 }
 0x27d   : > { %974 = vst.msk [vmem:[%s1718_s13 + $0x60] sm:$0xff] %vm961_vm0, %v954_v0 }
 0x27e   : > { %v956_v1 = vpop.xlane.xlu1 %955 }
 0x27f   : > { %975 = vst.msk [vmem:[%s1718_s13 + $0x68] sm:$0xff] %vm961_vm0, %v956_v1 }
 0x280   : > { %v958_v2 = vpop.xlane.xlu0 %957 }
 0x281   : > { %976 = vst.msk [vmem:[%s1718_s13 + $0x70] sm:$0xff] %vm961_vm0, %v958_v2 }
 0x282   : > { %v960_v3 = vpop.xlane.xlu1 %959 }
 0x283   : > { %977 = vst.msk [vmem:[%s1718_s13 + $0x78] sm:$0xff] %vm961_vm0, %v960_v3 }
 0x284 PF: > { %s25_s12 = sadd.s32 1, %s1439_s12   ;;  %s1770_s10 = smov %s1435_s11 }
 0x285   : > { %p22_p10 = scmp.ge.s32.totalorder %s25_s12, 5   ;;  %s1771_s11 = smov %s1773_s0 }
 0x287   :  { %24 = sbr.rel (!%p22_p10) target bundleno = 17 (0x11), region = 98 }

</bundles_post_ra>
